<compile_context>
chip_gen: v6e
topology: v6e:2x2x1
jax: 0.10.0
libtpu: 0.0.40
codegen_flags: <defaults>
</compile_context>

<pallas_src>
import math

import jax
import jax.numpy as jnp
from jax.experimental import pallas as pl
from jax.experimental.pallas import tpu as pltpu


def _round_up(x, m):
    return ((x + m - 1) // m) * m


def _sage_kernel(adj_ref, feat_k_ref, feat_i_ref, w_self_ref, w_neigh_ref,
                 out_ref, acc_ref, deg_ref):
    k = pl.program_id(1)

    @pl.when(k == 0)
    def _init():
        acc_ref[...] = jnp.zeros_like(acc_ref)
        deg_ref[...] = jnp.zeros_like(deg_ref)

    adj = adj_ref[...]                                   # (TM, TK), bf16 or f32

    # Partial neighbour sum: acc += adj_tile @ feat_tile (f32 accumulation).
    acc_ref[...] += jnp.dot(adj, feat_k_ref[...],
                            preferred_element_type=jnp.float32)
    # Partial row degree (0/1 entries -> exact when summed in f32).
    deg_ref[...] += jnp.sum(adj.astype(jnp.float32), axis=1, keepdims=True)

    @pl.when(k == pl.num_programs(1) - 1)
    def _finalize():
        deg = deg_ref[...] + 1.0                          # rowsum(adj) + 1
        inv = pl.reciprocal(deg, approx=True)             # EUP slot
        inv = inv * (2.0 - deg * inv)                     # one Newton step
        neigh = (acc_ref[...] * inv).astype(feat_i_ref.dtype)
        out = jnp.dot(feat_i_ref[...], w_self_ref[...],
                      preferred_element_type=jnp.float32)
        out += jnp.dot(neigh, w_neigh_ref[...],
                       preferred_element_type=jnp.float32)
        out_ref[...] = out.astype(out_ref.dtype)


def sage_conv(features, adj, weight, *, tm=256, tk=512, adj_dtype=jnp.bfloat16):
    """features: (N, F_in), adj: (N, N), weight: (F_out, 2*F_in) -> (N, F_out)."""
    n, f_in = features.shape
    f_out = weight.shape[0]
    assert weight.shape == (f_out, 2 * f_in)
    assert adj.shape == (n, n)

    # ---- wrapper glue: tile clamping, padding, dtype, weight split ----
    tm = max(8, min(tm, _round_up(n, 8)))        # sublane dim: multiple of 8
    tk = max(128, min(tk, _round_up(n, 128)))    # lane dim:    multiple of 128
    n_pad = _round_up(n, math.lcm(tm, tk))
    f_in_pad = _round_up(f_in, 128)
    f_out_pad = _round_up(f_out, 128)

    # adj shipped in a narrow dtype: 0/1 entries are exact in bf16 and the N^2
    # adj stream dominates HBM traffic.  Pass adj_dtype=None for weighted
    # adjacency matrices that need full precision.
    adj_p = jnp.pad(adj, ((0, n_pad - n), (0, n_pad - n)))
    if adj_dtype is not None:
        adj_p = adj_p.astype(adj_dtype)

    feat_p = jnp.pad(features, ((0, n_pad - n), (0, f_in_pad - f_in)))

    # nn.Linear weight (F_out, 2*F_in): split self / neighbour halves,
    # transpose, zero-pad to lane-dense shapes (extra rows/cols contribute 0).
    w_self = jnp.pad(weight[:, :f_in].T,
                     ((0, f_in_pad - f_in), (0, f_out_pad - f_out)))
    w_neigh = jnp.pad(weight[:, f_in:].T,
                      ((0, f_in_pad - f_in), (0, f_out_pad - f_out)))

    grid = (n_pad // tm, n_pad // tk)

    # VMEM budget: double-buffered inputs/output + resident weights + scratch.
    est = 2 * (tm * tk * adj_p.dtype.itemsize
               + tk * f_in_pad * feat_p.dtype.itemsize
               + tm * f_in_pad * feat_p.dtype.itemsize
               + 2 * f_in_pad * f_out_pad * w_self.dtype.itemsize
               + tm * f_out_pad * features.dtype.itemsize)
    est += tm * (f_in_pad + 128) * 4                      # f32 scratch
    vmem_limit = int(min(64 * 2**20, max(16 * 2**20, 1.5 * est)))

    out_padded = pl.pallas_call(
        _sage_kernel,
        out_shape=jax.ShapeDtypeStruct((n_pad, f_out_pad), features.dtype),
        grid_spec=pltpu.PrefetchScalarGridSpec(
            num_scalar_prefetch=0,
            grid=grid,
            in_specs=[
                pl.BlockSpec((tm, tk), lambda i, k: (i, k)),           # adj
                pl.BlockSpec((tk, f_in_pad), lambda i, k: (k, 0)),     # feat K-tile
                pl.BlockSpec((tm, f_in_pad), lambda i, k: (i, 0)),     # feat row-tile
                pl.BlockSpec((f_in_pad, f_out_pad), lambda i, k: (0, 0)),  # w_self
                pl.BlockSpec((f_in_pad, f_out_pad), lambda i, k: (0, 0)),  # w_neigh
            ],
            out_specs=pl.BlockSpec((tm, f_out_pad), lambda i, k: (i, 0)),
            scratch_shapes=[
                pltpu.VMEM((tm, f_in_pad), jnp.float32),   # partial adj @ feat
                pltpu.VMEM((tm, 1), jnp.float32),          # partial row degree
            ],
        ),
        compiler_params=pltpu.CompilerParams(
            dimension_semantics=("parallel", "arbitrary"),
            vmem_limit_bytes=vmem_limit,
        ),
    )(adj_p, feat_p, feat_p, w_self, w_neigh)

    return out_padded[:n, :f_out]


def sage_conv_ref(features, adj, weight):
    """Pure-JAX reference mirroring the PyTorch forward exactly."""
    deg = jnp.sum(adj, axis=1, keepdims=True) + 1.0
    neigh = jnp.dot(adj, features) / deg
    cat = jnp.concatenate([features, neigh], axis=-1)
    return jnp.dot(cat, weight.T)


if __name__ == "__main__":
    # Small deterministic problem (feature dims deliberately not 128-multiples
    # to exercise the lane padding path).
    N, F_IN, F_OUT = 256, 96, 64

    key = jax.random.PRNGKey(0)
    k_feat, k_adj, k_w = jax.random.split(key, 3)

    features = jax.random.normal(k_feat, (N, F_IN), dtype=jnp.float32)
    adj = (jax.random.uniform(k_adj, (N, N)) < 0.1).astype(jnp.float32)
    # nn.init.normal_ on Linear(2*F_IN, F_OUT, bias=False).weight: (F_OUT, 2*F_IN)
    weight = jax.random.normal(k_w, (F_OUT, 2 * F_IN), dtype=jnp.float32)

    ref = sage_conv_ref(features, adj, weight)

    # Tiled path: grid = (2, 2) row-tiles x K-tiles, exercises the accumulator.
    out = jax.block_until_ready(sage_conv(features, adj, weight, tm=128, tk=128))
    assert out.shape == (N, F_OUT)
    assert jnp.allclose(out, ref, atol=2e-3, rtol=2e-3), (
        f"mismatch vs reference (max abs err {jnp.max(jnp.abs(out - ref)):.3e})")

    # Default (larger) tiles clamp to a single block on this small problem.
    out2 = jax.block_until_ready(sage_conv(features, adj, weight))
    assert jnp.allclose(out2, ref, atol=2e-3, rtol=2e-3), "mismatch (default tiles)"

    print("KERNEL_OK")
</pallas_src>

<mosaic_0001>
module attributes {stable_mosaic.version = 11 : i64} {
  func.func @_sage_kernel(%arg0: i32, %arg1: i32, %arg2: memref<128x128xbf16, #tpu.memory_space<vmem>>, %arg3: memref<128x128xf32, #tpu.memory_space<vmem>>, %arg4: memref<128x128xf32, #tpu.memory_space<vmem>>, %arg5: memref<128x128xf32, #tpu.memory_space<vmem>>, %arg6: memref<128x128xf32, #tpu.memory_space<vmem>>, %arg7: memref<128x128xf32, #tpu.memory_space<vmem>>, %arg8: memref<128x128xf32, #tpu.memory_space<vmem>>, %arg9: memref<128x1xf32, #tpu.memory_space<vmem>>) attributes {dimension_semantics = [#tpu.dimension_semantics<parallel>, #tpu.dimension_semantics<arbitrary>], iteration_bounds = array<i64: 2, 2>, scalar_prefetch = 0 : i64, scratch_operands = 2 : i64, tpu.core_type = #tpu.core_type<tc>, window_params = [{transform_indices = @transform_0, window_bounds = array<i64: 128, 128>}, {transform_indices = @transform_1, window_bounds = array<i64: 128, 128>}, {transform_indices = @transform_2, window_bounds = array<i64: 128, 128>}, {pipeline_mode = #tpu.pipeline_mode<synchronous>, transform_indices = @transform_3, window_bounds = array<i64: 128, 128>}, {pipeline_mode = #tpu.pipeline_mode<synchronous>, transform_indices = @transform_4, window_bounds = array<i64: 128, 128>}, {transform_indices = @transform_5, window_bounds = array<i64: 128, 128>}]} {
    %c0_i32 = arith.constant 0 : i32
    %0 = arith.cmpi eq, %arg1, %c0_i32 : i32
    %1 = arith.extui %0 : i1 to i32
    %c0_i32_0 = arith.constant 0 : i32
    %2 = arith.cmpi ne, %1, %c0_i32_0 : i32
    scf.if %2 {
      %cst_14 = arith.constant 0.000000e+00 : f32
      %18 = vector.broadcast %cst_14 : f32 to vector<128x128xf32>
      %c0_15 = arith.constant 0 : index
      %c0_16 = arith.constant 0 : index
      %19 = vector.load %arg8[%c0_15, %c0_16] : memref<128x128xf32, #tpu.memory_space<vmem>>, vector<128x128xf32>
      tpu.vector_store %arg8[%c0_15, %c0_16], %18 {strides = array<i32>} : memref<128x128xf32, #tpu.memory_space<vmem>>, vector<128x128xf32>,
      %cst_17 = arith.constant 0.000000e+00 : f32
      %20 = vector.broadcast %cst_17 : f32 to vector<128x1xf32>
      %c0_18 = arith.constant 0 : index
      %c0_19 = arith.constant 0 : index
      %21 = vector.load %arg9[%c0_18, %c0_19] : memref<128x1xf32, #tpu.memory_space<vmem>>, vector<128x1xf32>
      tpu.vector_store %arg9[%c0_18, %c0_19], %20 {strides = array<i32>} : memref<128x1xf32, #tpu.memory_space<vmem>>, vector<128x1xf32>,
    } else {
    }
    %c0 = arith.constant 0 : index
    %c0_1 = arith.constant 0 : index
    %3 = vector.load %arg2[%c0, %c0_1] : memref<128x128xbf16, #tpu.memory_space<vmem>>, vector<128x128xbf16>
    %c0_2 = arith.constant 0 : index
    %c0_3 = arith.constant 0 : index
    %4 = vector.load %arg8[%c0_2, %c0_3] : memref<128x128xf32, #tpu.memory_space<vmem>>, vector<128x128xf32>
    %c0_4 = arith.constant 0 : index
    %c0_5 = arith.constant 0 : index
    %5 = vector.load %arg3[%c0_4, %c0_5] : memref<128x128xf32, #tpu.memory_space<vmem>>, vector<128x128xf32>
    %cst = arith.constant dense<0.000000e+00> : vector<128x128xf32>
    %6 = tpu.matmul %3, %5, %cst {dimension_numbers = #tpu.dot_dimension_numbers<[1], [0], [0], [1], [0, 0, 1, 1], [], []>} : vector<128x128xbf16>, vector<128x128xf32>, vector<128x128xf32> -> vector<128x128xf32>
    %7 = arith.addf %4, %6 : vector<128x128xf32>
    %c0_6 = arith.constant 0 : index
    %c0_7 = arith.constant 0 : index
    %8 = vector.load %arg8[%c0_6, %c0_7] : memref<128x128xf32, #tpu.memory_space<vmem>>, vector<128x128xf32>
    tpu.vector_store %arg8[%c0_6, %c0_7], %7 {strides = array<i32>} : memref<128x128xf32, #tpu.memory_space<vmem>>, vector<128x128xf32>,
    %c0_8 = arith.constant 0 : index
    %c0_9 = arith.constant 0 : index
    %9 = vector.load %arg9[%c0_8, %c0_9] : memref<128x1xf32, #tpu.memory_space<vmem>>, vector<128x1xf32>
    %10 = arith.extf %3 : vector<128x128xbf16> to vector<128x128xf32>
    %cst_10 = arith.constant dense<0.000000e+00> : vector<128xf32>
    %11 = vector.multi_reduction <add>, %10, %cst_10 [1] : vector<128x128xf32> to vector<128xf32>
    %12 = vector.shape_cast %11 : vector<128xf32> to vector<128x1xf32>
    %13 = arith.addf %9, %12 : vector<128x1xf32>
    %c0_11 = arith.constant 0 : index
    %c0_12 = arith.constant 0 : index
    %14 = vector.load %arg9[%c0_11, %c0_12] : memref<128x1xf32, #tpu.memory_space<vmem>>, vector<128x1xf32>
    tpu.vector_store %arg9[%c0_11, %c0_12], %13 {strides = array<i32>} : memref<128x1xf32, #tpu.memory_space<vmem>>, vector<128x1xf32>,
    %c1_i32 = arith.constant 1 : i32
    %15 = arith.cmpi eq, %arg1, %c1_i32 : i32
    %16 = arith.extui %15 : i1 to i32
    %c0_i32_13 = arith.constant 0 : i32
    %17 = arith.cmpi ne, %16, %c0_i32_13 : i32
    scf.if %17 {
      %c0_14 = arith.constant 0 : index
      %c0_15 = arith.constant 0 : index
      %18 = vector.load %arg9[%c0_14, %c0_15] : memref<128x1xf32, #tpu.memory_space<vmem>>, vector<128x1xf32>
      %cst_16 = arith.constant 1.000000e+00 : f32
      %19 = vector.broadcast %cst_16 : f32 to vector<128x1xf32>
      %20 = arith.addf %18, %19 : vector<128x1xf32>
      %21 = tpu.reciprocal %20 {approx = true} : vector<128x1xf32> -> vector<128x1xf32>
      %22 = arith.mulf %20, %21 : vector<128x1xf32>
      %cst_17 = arith.constant 2.000000e+00 : f32
      %23 = vector.broadcast %cst_17 : f32 to vector<128x1xf32>
      %24 = arith.subf %23, %22 : vector<128x1xf32>
      %25 = arith.mulf %21, %24 : vector<128x1xf32>
      %c0_18 = arith.constant 0 : index
      %c0_19 = arith.constant 0 : index
      %26 = vector.load %arg8[%c0_18, %c0_19] : memref<128x128xf32, #tpu.memory_space<vmem>>, vector<128x128xf32>
      %27 = vector.broadcast %25 : vector<128x1xf32> to vector<128x128xf32>
      %28 = arith.mulf %26, %27 : vector<128x128xf32>
      %c0_20 = arith.constant 0 : index
      %c0_21 = arith.constant 0 : index
      %29 = vector.load %arg4[%c0_20, %c0_21] : memref<128x128xf32, #tpu.memory_space<vmem>>, vector<128x128xf32>
      %c0_22 = arith.constant 0 : index
      %c0_23 = arith.constant 0 : index
      %30 = vector.load %arg5[%c0_22, %c0_23] : memref<128x128xf32, #tpu.memory_space<vmem>>, vector<128x128xf32>
      %cst_24 = arith.constant dense<0.000000e+00> : vector<128x128xf32>
      %31 = tpu.matmul %29, %30, %cst_24 {dimension_numbers = #tpu.dot_dimension_numbers<[1], [0], [0], [1], [0, 0, 1, 1], [], []>} : vector<128x128xf32>, vector<128x128xf32>, vector<128x128xf32> -> vector<128x128xf32>
      %c0_25 = arith.constant 0 : index
      %c0_26 = arith.constant 0 : index
      %32 = vector.load %arg6[%c0_25, %c0_26] : memref<128x128xf32, #tpu.memory_space<vmem>>, vector<128x128xf32>
      %cst_27 = arith.constant dense<0.000000e+00> : vector<128x128xf32>
      %33 = tpu.matmul %28, %32, %cst_27 {dimension_numbers = #tpu.dot_dimension_numbers<[1], [0], [0], [1], [0, 0, 1, 1], [], []>} : vector<128x128xf32>, vector<128x128xf32>, vector<128x128xf32> -> vector<128x128xf32>
      %34 = arith.addf %31, %33 : vector<128x128xf32>
      %c0_28 = arith.constant 0 : index
      %c0_29 = arith.constant 0 : index
      %35 = vector.load %arg7[%c0_28, %c0_29] : memref<128x128xf32, #tpu.memory_space<vmem>>, vector<128x128xf32>
      tpu.vector_store %arg7[%c0_28, %c0_29], %34 {strides = array<i32>} : memref<128x128xf32, #tpu.memory_space<vmem>>, vector<128x128xf32>,
    } else {
    }
    return
  }
  func.func @transform_0(%arg0: i32, %arg1: i32) -> (i32, i32) {
    %c0_i32 = arith.constant 0 : i32
    return %arg0, %arg1 : i32, i32
  }
  func.func @transform_1(%arg0: i32, %arg1: i32) -> (i32, i32) {
    %c0_i32 = arith.constant 0 : i32
    %c0_i32_0 = arith.constant 0 : i32
    return %arg1, %c0_i32 : i32, i32
  }
  func.func @transform_2(%arg0: i32, %arg1: i32) -> (i32, i32) {
    %c0_i32 = arith.constant 0 : i32
    %c0_i32_0 = arith.constant 0 : i32
    return %arg0, %c0_i32 : i32, i32
  }
  func.func @transform_3(%arg0: i32, %arg1: i32) -> (i32, i32) {
    %c0_i32 = arith.constant 0 : i32
    %c0_i32_0 = arith.constant 0 : i32
    %c0_i32_1 = arith.constant 0 : i32
    return %c0_i32, %c0_i32_0 : i32, i32
  }
  func.func @transform_4(%arg0: i32, %arg1: i32) -> (i32, i32) {
    %c0_i32 = arith.constant 0 : i32
    %c0_i32_0 = arith.constant 0 : i32
    %c0_i32_1 = arith.constant 0 : i32
    return %c0_i32, %c0_i32_0 : i32, i32
  }
  func.func @transform_5(%arg0: i32, %arg1: i32) -> (i32, i32) {
    %c0_i32 = arith.constant 0 : i32
    %c0_i32_0 = arith.constant 0 : i32
    return %arg0, %c0_i32 : i32, i32
  }
}

</mosaic_0001>

<bundles_post_ra>
// kernel: tpu_custom_call.1
= control target key start
LH: loop header
LB: loop body
LE: loop exit
PB: predicated region body
PF: predicated region fallthrough
CT: control target
= control target key end

     0   :  { %s2897_s0 = inlined_call_operand.hbm [shape: bf16[256,256], index: 0, kind: input, shape index: {}]   ;;  %s2898_s1 = inlined_call_operand.hbm [shape: f32[256,128], index: 1, kind: input, shape index: {}]   ;;  %s2899_s2 = inlined_call_operand.hbm [shape: f32[256,128], index: 2, kind: input, shape index: {}]   ;;  %s2900_s3 = inlined_call_operand.hbm [shape: f32[128,128], index: 3, kind: input, shape index: {}]   ;;  %s2901_s4 = inlined_call_operand.hbm [shape: f32[128,128], index: 4, kind: input, shape index: {}]   ;;  %s2902_s5 = inlined_call_operand.hbm [shape: f32[256,128], index: 5, kind: output, shape index: {}]  }
   0x1   :  { %2919 = sst [smem:[#allocation27_spill]] %s2897_s0 }
   0x2   :  { %2920 = sst [smem:[#allocation28_spill]] %s2898_s1 }
   0x3   :  { %2921 = sst [smem:[#allocation29_spill]] %s2899_s2 }
   0x4   :  { %2922 = sst [smem:[#allocation30_spill]] %s2900_s3 }
   0x5   :  { %2923 = sst [smem:[#allocation31_spill]] %s2901_s4 }
   0x6   :  { %2924 = sst [smem:[#allocation32_spill]] %s2902_s5 }
   0x7   :  { %10 = vsyncpa [#allocation5], 0 }
   0x8   :  { %12 = vsyncpa [#allocation5 + $0x1], 0 }
   0x9   :  { %13 = vsyncpa [#allocation8], 0 }
   0xa   :  { %15 = vsyncpa [#allocation8 + $0x1], 0 }
   0xb   :  { %16 = vsyncpa [#allocation11], 0 }
   0xc   :  { %17 = vsyncpa [#allocation6], 0 }
   0xd   :  { %19 = vsyncpa [#allocation6 + $0x1], 0  ;;  %s2364_s18 = smov 0   ;;  %s2366_s19 = smov 0  }
   0xe   :  { %s2368_s20 = smov 0   ;;  %s2370_s21 = smov 0  }
   0xf   :  { %s2372_s22 = smov 0   ;;  %s2374_s23 = smov 0  }
  0x10   :  { %s2376_s24 = smov 0   ;;  %s2378_s25 = smov 0  }
  0x11   :  { %s2380_s26 = smov 0   ;;  %s2382_s27 = smov 0  }
  0x12   :  { %s2384_s28 = smov 0   ;;  %s2386_s29 = smov 0  }
  0x13   :  { %s2388_s30 = smov 0   ;;  %s2390_s6 = smov 0  }
  0x14 LB: > { %2925 = sst [smem:[#allocation19_spill]] %s2282_s22  ;;  %s2435_s7 = sadd.s32 4294967295, %s2318_s6   ;;  %s2318_s6 = sphi %s2390_s6, %s25_s6   ;;  %s2314_s30 = sphi %s2388_s30, %s2988_s30   ;;  %s2310_s29 = sphi %s2386_s29, %s2987_s29   ;;  %s2306_s28 = sphi %s2384_s28, %s2986_s28   ;;  %s2302_s27 = sphi %s2382_s27, %s2985_s27   ;;  %s2298_s26 = sphi %s2380_s26, %s2984_s26   ;;  %s2294_s25 = sphi %s2378_s25, %s2983_s25   ;;  %s2290_s24 = sphi %s2376_s24, %s2982_s24   ;;  %s2286_s23 = sphi %s2374_s23, %s2981_s23   ;;  %s2282_s22 = sphi %s2372_s22, %s2980_s22   ;;  %s2278_s21 = sphi %s2370_s21, %s2973_s21   ;;  %s2274_s20 = sphi %s2368_s20, %s2979_s20   ;;  %s2270_s19 = sphi %s2366_s19, %s2978_s19   ;;  %s2266_s18 = sphi %s2364_s18, %s2977_s18  }
  0x15   : > { %2926 = sst [smem:[#allocation20_spill]] %s2302_s27  ;;  %p1491_p0 = scmp.ge.s32.totalorder %s2318_s6, 1 }
  0x16   : > { %2927 = sst [smem:[#allocation21_spill]] %s2306_s28  ;;  %p2915_p1 = scmp.eq.s32.totalorder %s2435_s7, 0 }
  0x17   : > { %p190_p3 = scmp.lt.s32.totalorder %s2318_s6, 5  ;;  %s2320_s9 = smov [#allocation10]  }
  0x18   : > { %s202_s10 = sshll.u32 %s2320_s9, 4  ;;  %s203_s10 = int_to_ptr.vmem [resolvable:$true] %s202_s10 }
  0x19   : > { %p2441_p4 = pnand %p1491_p0, %p190_p3  ;;  %s2037_s12 = scalar_lea.vmem %s203_s10, 2048 }
  0x1a   : > { %p2038_p8 = scmp.ne.s32.totalorder %s203_s10, %s2037_s12  ;;  %p2045_p11 = scmp.lt.s32.totalorder %s203_s10, %s203_s10 }
  0x1b   : > { %s2928_s8 = scalar_select %p2441_p4, 1, 0 }
  0x1c   : > { %p1827_p5 = pneg %p2441_p4  ;;  %p2046_p12 = scmp.lt.s32.totalorder %s2037_s12, %s2037_s12 }
  0x1d   : > { %2929 = sst [smem:[#allocation22_spill]] %s2928_s8 }
  0x1e   : > { %p2449_p6 = pnand %p1827_p5, %p2915_p1  ;;  %p2047_p13 = por %p2046_p12, %p2045_p11 }
  0x20   : > { %p2028_p7 = pneg %p2449_p6 }
  0x22   : > { %p2040_p9 = pnand %p2038_p8, %p2028_p7 }
  0x24   : > { %p2041_p10 = pneg %p2040_p9 }
  0x26   : > { %p2048_p0 = pnand %p2047_p13, %p2041_p10 }
  0x28   : > { %2051 = shalt.err (!%p2048_p0)
}
  0x29   : > { %s2904_s13 = smov 128   ;;  %s2906_s14 = smov 8  }
  0x2a   : > { %s2931_s3 = sld [smem:[#allocation30_spill]]  ;;  %s34_s17 = sadd.s32 1, %s2310_s29 }
  0x2b   : > { %s37_s9 = sadd.s32 1, %s2314_s30  ;;  %p35_p3 = scmp.ge.s32.totalorder %s34_s17, 2 }
  0x2c   : > { %p2916_p5 = scmp.eq.s32.totalorder %s2318_s6, 0  ;;  %s72_s12 = sadd.s32 1, %s2286_s23 }
  0x2d   : > { %p79_p8 = scmp.ne.s32.totalorder %s2286_s23, %s2282_s22  ;;  %s2990_s17 = smov (%p35_p3, %s34_s17), 0 }
  0x2e   : > { %2932 = sst [smem:[#allocation23_spill]] %s2990_s17  ;;  %s2992_s9 = smov (!%p35_p3, %s37_s9), %s2314_s30 }
  0x2f   : > { %s42_s5 = ssub.s32 %s2310_s29, %s2990_s17  ;;  %p2479_p9 = por %p79_p8, %p2916_p5 }
  0x30   : > { %1830 = dma.hbm_to_vmem [thread:$0]  (!%p2449_p6), %s2931_s3, 2048, %s203_s10, [#allocation11], %s2904_s13, %s2904_s13, %s2906_s14  }
  0x31   : > { %p39_p10 = scmp.ge.s32.totalorder %s2992_s9, 2  ;;  %p70_p11 = scmp.eq.s32.totalorder %s42_s5, 0 }
  0x32   : > { %p85_p12 = scmp.ne.s32.totalorder %s2282_s22, %s2278_s21  ;;  %p2914_p13 = scmp.lt.s32.totalorder %s2318_s6, 4 }
  0x33   : > { %s2994_s9 = smov (%p39_p10, %s2992_s9), 0  ;;  %s252_s3 = sand.u32 1, %s2318_s6  }
  0x34   : > { %2934 = sst [smem:[#allocation24_spill]] %s2994_s9  ;;  %s2493_s16 = ssub.s32 %s2314_s30, %s2994_s9 }
  0x35   : > { %s2489_s15 = scalar_select %p70_p11, %s2286_s23, %s72_s12  }
  0x36   : > { %p2497_p0 = por %p85_p12, %p2915_p1  ;;  %s43_s14 = sor.u32 %s42_s5, %s2493_s16 }
  0x37   : > { %2935 = sst [smem:[#allocation25_spill]] %s2489_s15  ;;  %p2503_p8 = scmp.eq.s32.totalorder %s43_s14, 0 }
  0x38   : > { %s2936_s13 = scalar_select %p2497_p0, 1, 0 }
  0x39   : > { %s254_s17 = sand.u32 1, %s2286_s23   ;;  %s1528_s12 = sshll.u32 %s2310_s29, 11 }
  0x3a   : > { %2937 = sst [smem:[#allocation26_spill]] %s2936_s13  ;;  %s1499_s28 = sshll.u32 %s254_s17, 7 }
  0x3b   : > { %s2939_s1 = sld [smem:[#allocation28_spill]]  ;;  %s256_s22 = scalar_lea.vmem [#allocation7], %s1499_s28 }
  0x3c   : > { %s263_s8 = sshll.u32 %s256_s22, 4  ;;  %p2517_p10 = pnand %p2914_p13, %p2479_p9  ;;  %s264_s8 = int_to_ptr.vmem [resolvable:$true] %s263_s8 }
  0x3d   : > { %s2323_s5 = smov [#allocation12]   ;;  %s2521_s2 = scalar_lea.sflag [#allocation8], %s252_s3 }
  0x3e   : > { %s215_s14 = sshll.u32 %s2323_s5, 4  ;;  %p2054_p11 = pneg %p2517_p10  ;;  %s216_s14 = int_to_ptr.vmem [resolvable:$true] %s215_s14 }
  0x3f   : > { %s2065_s17 = scalar_lea.vmem %s264_s8, 2048  ;;  %s2324_s28 = smov [#allocation7]  }
  0x40   : > { %p2066_p12 = scmp.ne.s32.totalorder %s264_s8, %s2065_s17  ;;  %s2070_s22 = sshll.u32 %s2324_s28, 4  ;;  %s2071_s22 = int_to_ptr.vmem [resolvable:$false] %s2070_s22 }
  0x41   : > { %s262_s27 = scalar_lea.hbm %s2939_s1, %s1528_s12  ;;  %s2072_s9 = scalar_lea.vmem %s2071_s22, 4096 }
  0x42   : > { %p2068_p2 = pnand %p2066_p12, %p2054_p11  ;;  %p2073_p9 = scmp.lt.s32.totalorder %s264_s8, %s2071_s22 }
  0x43   : > { %p2074_p13 = scmp.lt.s32.totalorder %s2072_s9, %s2065_s17 }
  0x44   : > { %p2069_p3 = pneg %p2068_p2 }
  0x45   : > { %p2075_p1 = por %p2074_p13, %p2073_p9 }
  0x47   : > { %p2076_p5 = pnand %p2075_p1, %p2069_p3 }
  0x49   : > { %2079 = shalt.err (!%p2076_p5)
}
  0x4a   : > { %s2941_s10 = smov 8   ;;  %s2942_s3 = smov 128  }
  0x4b   : > { %1840 = dma.hbm_to_vmem [thread:$0]  (!%p2517_p10), %s262_s27, 2048, %s264_s8, %s2521_s2, %s2942_s3, %s2942_s3, %s2941_s10  }
  0x4c   : > { %s2091_s15 = scalar_lea.vmem %s216_s14, 2048  ;;  %p2099_p0 = scmp.lt.s32.totalorder %s216_s14, %s216_s14 }
  0x4d   : > { %p2092_p2 = scmp.ne.s32.totalorder %s216_s14, %s2091_s15  ;;  %p2100_p4 = scmp.lt.s32.totalorder %s2091_s15, %s2091_s15 }
  0x4f   : > { %p2094_p11 = pnand %p2092_p2, %p2028_p7  ;;  %p2101_p13 = por %p2100_p4, %p2099_p0 }
  0x51   : > { %p2095_p12 = pneg %p2094_p11 }
  0x53   : > { %p2102_p1 = pnand %p2101_p13, %p2095_p12 }
  0x55   : > { %2105 = shalt.err (!%p2102_p1)
}
  0x56   : > { %s2943_s4 = sld [smem:[#allocation31_spill]]  ;;  %s46_s27 = sadd.s32 1, %s2298_s26 }
  0x57   : > { %s2546_s8 = scalar_select %p2503_p8, %s2298_s26, %s46_s27  }
  0x58   : > { %p53_p4 = scmp.ne.s32.totalorder %s2298_s26, %s2294_s25  ;;  %p59_p7 = scmp.ne.s32.totalorder %s2294_s25, %s2290_s24 }
  0x59   : > { %s229_s11 = sand.u32 1, %s2298_s26   ;;  %s1527_s5 = sshll.u32 %s2314_s30, 5 }
  0x5a   : > { %p2944_p5 = scmp.eq.s32.totalorder %s2318_s6, 0  ;;  %p2945_p3 = scmp.eq.s32.totalorder %s2435_s7, 0 }
  0x5b   : > { %s1495_s28 = sshll.u32 %s229_s11, 6  ;;  %s239_s22 = sadd.s32 %s2310_s29, %s1527_s5 }
  0x5c   : > { %1833 = dma.hbm_to_vmem [thread:$0]  (!%p2449_p6), %s2943_s4, 2048, %s216_s14, [#allocation11], %s2942_s3, %s2942_s3, %s2941_s10  }
  0x5d   : > { %p55_p0 = por %p2944_p5, %p53_p4  ;;  %p2558_p10 = por %p2945_p3, %p59_p7 }
  0x5e   : > { %s1498_s9 = sshll.u32 %s239_s22, 6  ;;  %s233_s14 = scalar_lea.vmem [#allocation4], %s1495_s28 }
  0x5f   : > { %s242_s15 = sshll.u32 %s233_s14, 4  ;;  %s2947_s0 = sld [smem:[#allocation27_spill]]  ;;  %s243_s15 = int_to_ptr.vmem [resolvable:$true] %s242_s15 }
  0x60   : > { %p2948_p6 = scmp.lt.s32.totalorder %s2318_s6, 4  ;;  %s230_s27 = scalar_lea.sflag [#allocation5], %s229_s11 }
  0x61   : > { %s2119_s1 = scalar_lea.vmem %s243_s15, 1024  ;;  %s2325_s5 = smov [#allocation4]  }
  0x62   : > { %p2568_p8 = pnand %p2948_p6, %p55_p0  ;;  %p2120_p2 = scmp.ne.s32.totalorder %s243_s15, %s2119_s1 }
  0x63   : > { %s2124_s28 = sshll.u32 %s2325_s5, 4  ;;  %s2125_s28 = int_to_ptr.vmem [resolvable:$false] %s2124_s28 }
  0x64   : > { %p2108_p9 = pneg %p2568_p8  ;;  %s2126_s22 = scalar_lea.vmem %s2125_s28, 2048 }
  0x65   : > { %s241_s12 = scalar_lea.hbm %s2947_s0, %s1498_s9  ;;  %p2127_p13 = scmp.lt.s32.totalorder %s243_s15, %s2125_s28 }
  0x66   : > { %p2122_p11 = pnand %p2120_p2, %p2108_p9  ;;  %p2128_p1 = scmp.lt.s32.totalorder %s2126_s22, %s2119_s1 }
  0x68   : > { %p2123_p12 = pneg %p2122_p11  ;;  %p2129_p4 = por %p2128_p1, %p2127_p13 }
  0x6a   : > { %p2130_p7 = pnand %p2129_p4, %p2123_p12 }
  0x6c   : > { %2133 = shalt.err (!%p2130_p7)
}
  0x6d   : > { %s2326_s9 = smov 64   ;;  %s2327_s11 = smov 4  }
  0x6e   : > { %1837 = dma.hbm_to_vmem [thread:$0]  (!%p2568_p8), %s241_s12, 1024, %s243_s15, %s230_s27, %s2942_s3, %s2326_s9, %s2327_s11  }
  0x6f   : > { %s1490_s1 = sadd.s32 4294967294, %s2318_s6   ;;  %s98_s14 = sadd.s32 1, %s2274_s20 }
  0x70   : > { %p2950_p5 = scmp.eq.s32.totalorder %s2493_s16, 0  ;;  %p105_p0 = scmp.ne.s32.totalorder %s2274_s20, %s2270_s19 }
  0x71   : > { %p111_p3 = scmp.ne.s32.totalorder %s2270_s19, %s2266_s18  ;;  %p183_p6 = scmp.eq.s32.totalorder %s1490_s1, 3 }
  0x72   : > { %s2582_s13 = scalar_select %p2950_p5, %s2274_s20, %s98_s14  }
  0x73   : > { %s275_s21 = sand.u32 1, %s2274_s20   ;;  %p2951_p9 = scmp.eq.s32.totalorder %s2318_s6, 0 }
  0x74   : > { %p2952_p11 = scmp.eq.s32.totalorder %s2435_s7, 0  ;;  %p2954_p13 = scmp.eq.s32.totalorder %s2435_s7, 3 }
  0x75   : > { %p107_p2 = por %p105_p0, %p2951_p9  ;;  %p2603_p8 = por %p183_p6, %p111_p3 }
  0x76   : > { %p2593_p12 = por %p111_p3, %p2952_p11  ;;  %p2599_p1 = por %p2954_p13, %p105_p0 }
  0x77   : > { %s2956_s16 = scalar_select %p2603_p8, 1, 0 }
  0x78   : > { %s1502_s12 = sshll.u32 %s275_s21, 7  ;;  %s1529_s24 = sshll.u32 %s2314_s30, 11 }
  0x79   : > { %s2957_s22 = sld [smem:[#allocation29_spill]]  ;;  %s277_s11 = scalar_lea.vmem [#allocation9], %s1502_s12 }
  0x7a   : > { %s284_s1 = sshll.u32 %s277_s11, 4  ;;  %p2958_p4 = scmp.lt.s32.totalorder %s2318_s6, 4  ;;  %s285_s1 = int_to_ptr.vmem [resolvable:$true] %s284_s1 }
  0x7b   : > { %s2147_s0 = scalar_lea.vmem %s285_s1, 2048  ;;  %s2328_s21 = smov [#allocation9]  }
  0x7c   : > { %p2613_p7 = pnand %p2958_p4, %p107_p2  ;;  %p2148_p0 = scmp.ne.s32.totalorder %s285_s1, %s2147_s0 }
  0x7d   : > { %s2152_s4 = sshll.u32 %s2328_s21, 4  ;;  %s2153_s4 = int_to_ptr.vmem [resolvable:$false] %s2152_s4 }
  0x7e   : > { %p2136_p5 = pneg %p2613_p7  ;;  %s2154_s27 = scalar_lea.vmem %s2153_s4, 4096 }
  0x7f   : > { %s283_s9 = scalar_lea.hbm %s2957_s22, %s1529_s24  ;;  %p2155_p9 = scmp.lt.s32.totalorder %s285_s1, %s2153_s4 }
  0x80   : > { %p2150_p3 = pnand %p2148_p0, %p2136_p5  ;;  %p2156_p11 = scmp.lt.s32.totalorder %s2154_s27, %s2147_s0 }
  0x82   : > { %p2151_p6 = pneg %p2150_p3  ;;  %p2157_p13 = por %p2156_p11, %p2155_p9 }
  0x84   : > { %p2158_p8 = pnand %p2157_p13, %p2151_p6 }
  0x86   : > { %2161 = shalt.err (!%p2158_p8)
}
  0x87   : > { %1843 = dma.hbm_to_vmem [thread:$0]  (!%p2613_p7), %s283_s9, 2048, %s285_s1, %s2521_s2, %s2942_s3, %s2942_s3, %s2941_s10  }
  0x88   : > { %s2960_s12 = sld [smem:[#allocation22_spill]] }
  0x8e   : > { %p2961_p2 = scmp.ne.s32.totalorder %s2960_s12, 0 }
  0x8f   : > { %s298_s24 = sand.u32 (!%p2961_p2), 1, %s2294_s25  }
  0x90   : > { %296 = sbr.rel (%p2961_p2) target bundleno = 846 (0x34e), region = 40  ;;  %s1506_s28 = sshll.u32 (!%p2961_p2), %s298_s24, 6 }
  0x91   : > { %s299_s22 = scalar_lea.sflag (!%p2961_p2), [#allocation5], %s298_s24  ;;  %s2628_s4 = scalar_lea.vmem (!%p2961_p2), [#allocation4], %s1506_s28 }
  0x95   : > { %2245 = dma.done.wait (%p2558_p10), %s299_s22, 1024  }
  0x96   : > { %2247 = vsyncadd (%p2558_p10), %s299_s22, 4294966272  ;;  %s2962_s0 = sld [smem:[#allocation19_spill]]  ;;  %s307_s14 = sand.u32 1, %s2435_s7  }
  0x97   : > { %s2963_s11 = sld [smem:[#allocation26_spill]]  ;;  %s308_s3 = scalar_lea.sflag [#allocation8], %s307_s14 }
  0x9c   : > { %s309_s2 = sand.u32 1, %s2962_s0  }
  0x9d   : > { %s1507_s10 = sshll.u32 %s309_s2, 7  ;;  %p2964_p8 = scmp.ne.s32.totalorder %s2963_s11, 0 }
  0x9e   : > { %s2636_s9 = scalar_lea.vmem [#allocation7], %s1507_s10 }
  0x9f   : > { %2249 = dma.done.wait (%p2964_p8), %s308_s3, 2048  }
  0xa0   : > { %2251 = vsyncadd (%p2964_p8), %s308_s3, 4294965248  ;;  %s318_s1 = sand.u32 1, %s2270_s19  }
  0xa1   : > { %s1508_s17 = sshll.u32 %s318_s1, 7 }
  0xa2   : > { %s2645_s21 = scalar_lea.vmem [#allocation9], %s1508_s17 }
  0xa3   : > { %2253 = dma.done.wait (%p2593_p12), %s308_s3, 2048  }
  0xa4   : > { %2255 = vsyncadd (%p2593_p12), %s308_s3, 4294965248  ;;  %p2965_p10 = scmp.eq.s32.totalorder %s2435_s7, 0 }
  0xa6   : > { %2257 = dma.done.wait (%p2965_p10), [#allocation11], 4096   ;;  %p2966_p4 = pmov %p2965_p10 }
  0xa7   : > { %s2655_s27 = scalar_lea.vmem [#allocation13], %s1508_s17  ;;  %s2967_s12 = sld [smem:[#allocation20_spill]] }
  0xa8   : > { %2259 = vsyncadd (%p2966_p4), [#allocation11], 4294963200 }
  0xad   : > { %p1512_p7 = scmp.ne.s32.totalorder %s2967_s12, 0 }
  0xaf   : > { %373 = sbr.rel (%p1512_p7) target bundleno = 197 (0xc5), region = 64 }
  0xb4   : > { %vm390_vm0 = vcmask 7168   ;;  %v2329_v0 = vmov 0.0  }
  0xb5   : > { %374 = vst [vmem:[#allocation2 + $0x30] sm:$0xff] %v2329_v0  ;;  %375 = vst [vmem:[#allocation2] sm:$0xff] %v2329_v0 }
  0xb6   : > { %376 = vst [vmem:[#allocation2 + $0x58] sm:$0xff] %v2329_v0  ;;  %377 = vst [vmem:[#allocation2 + $0x18] sm:$0xff] %v2329_v0 }
  0xb7   : > { %378 = vst [vmem:[#allocation2 + $0x50] sm:$0xff] %v2329_v0  ;;  %379 = vst [vmem:[#allocation2 + $0x68] sm:$0xff] %v2329_v0 }
  0xb8   : > { %380 = vst [vmem:[#allocation2 + $0x8] sm:$0xff] %v2329_v0  ;;  %381 = vst [vmem:[#allocation2 + $0x48] sm:$0xff] %v2329_v0 }
  0xb9   : > { %382 = vst [vmem:[#allocation2 + $0x40] sm:$0xff] %v2329_v0  ;;  %383 = vst [vmem:[#allocation2 + $0x20] sm:$0xff] %v2329_v0 }
  0xba   : > { %384 = vst [vmem:[#allocation2 + $0x10] sm:$0xff] %v2329_v0  ;;  %385 = vst [vmem:[#allocation2 + $0x38] sm:$0xff] %v2329_v0 }
  0xbb   : > { %386 = vst [vmem:[#allocation2 + $0x60] sm:$0xff] %v2329_v0  ;;  %387 = vst [vmem:[#allocation2 + $0x70] sm:$0xff] %v2329_v0 }
  0xbc   : > { %388 = vst [vmem:[#allocation2 + $0x78] sm:$0xff] %v2329_v0  ;;  %389 = vst [vmem:[#allocation2 + $0x28] sm:$0xff] %v2329_v0 }
  0xbd   : > { %391 = vst.msk [vmem:[#allocation3] sm:$0xff] %vm390_vm0, %v2329_v0  ;;  %392 = vst.msk [vmem:[#allocation3 + $0x8] sm:$0xff] %vm390_vm0, %v2329_v0 }
  0xbe   : > { %393 = vst.msk [vmem:[#allocation3 + $0x10] sm:$0xff] %vm390_vm0, %v2329_v0  ;;  %394 = vst.msk [vmem:[#allocation3 + $0x18] sm:$0xff] %vm390_vm0, %v2329_v0 }
  0xbf   : > { %395 = vst.msk [vmem:[#allocation3 + $0x20] sm:$0xff] %vm390_vm0, %v2329_v0  ;;  %396 = vst.msk [vmem:[#allocation3 + $0x28] sm:$0xff] %vm390_vm0, %v2329_v0 }
  0xc0   : > { %397 = vst.msk [vmem:[#allocation3 + $0x30] sm:$0xff] %vm390_vm0, %v2329_v0  ;;  %398 = vst.msk [vmem:[#allocation3 + $0x38] sm:$0xff] %vm390_vm0, %v2329_v0 }
  0xc1   : > { %399 = vst.msk [vmem:[#allocation3 + $0x40] sm:$0xff] %vm390_vm0, %v2329_v0  ;;  %400 = vst.msk [vmem:[#allocation3 + $0x48] sm:$0xff] %vm390_vm0, %v2329_v0 }
  0xc2   : > { %401 = vst.msk [vmem:[#allocation3 + $0x50] sm:$0xff] %vm390_vm0, %v2329_v0  ;;  %402 = vst.msk [vmem:[#allocation3 + $0x58] sm:$0xff] %vm390_vm0, %v2329_v0 }
  0xc3   : > { %403 = vst.msk [vmem:[#allocation3 + $0x60] sm:$0xff] %vm390_vm0, %v2329_v0  ;;  %404 = vst.msk [vmem:[#allocation3 + $0x68] sm:$0xff] %vm390_vm0, %v2329_v0 }
  0xc4   : > { %405 = vst.msk [vmem:[#allocation3 + $0x70] sm:$0xff] %vm390_vm0, %v2329_v0  ;;  %406 = vst.msk [vmem:[#allocation3 + $0x78] sm:$0xff] %vm390_vm0, %v2329_v0 }
  0xc5 PF: > { %v454_v1 = vld [vmem:[%s2636_s9 + $0x78] sm:$0xff]  ;;  %v453_v2 = vld [vmem:[%s2636_s9 + $0x70] sm:$0xff]  ;;  %v452_v3 = vld [vmem:[%s2636_s9 + $0x68] sm:$0xff]  ;;  %vm744_vm1 = vcmask 7168   ;;  %s2968_s7 = sld [smem:[#allocation20_spill]] }
  0xc6   : > { %1619 = vmatprep.subr.mxu0 %v454_v1  ;;  %1779 = vmatprep.subr.mxu1 %v454_v1  ;;  %v451_v4 = vld [vmem:[%s2636_s9 + $0x60] sm:$0xff]  ;;  %v450_v5 = vld [vmem:[%s2636_s9 + $0x58] sm:$0xff]  ;;  %v449_v6 = vld [vmem:[%s2636_s9 + $0x50] sm:$0xff] }
  0xc7   : > { %1620 = vmatpush3.msra.mxu0 %v454_v1  ;;  %1795 = vmatpush3.msra.mxu1 %v454_v1  ;;  %v448_v7 = vld [vmem:[%s2636_s9 + $0x48] sm:$0xff]  ;;  %v447_v8 = vld [vmem:[%s2636_s9 + $0x40] sm:$0xff]  ;;  %v446_v9 = vld [vmem:[%s2636_s9 + $0x38] sm:$0xff] }
  0xc8   : > { %1621 = vmatprep.subr.mxu0 %v453_v2  ;;  %1780 = vmatprep.subr.mxu1 %v453_v2  ;;  %v445_v10 = vld [vmem:[%s2636_s9 + $0x30] sm:$0xff]  ;;  %v444_v11 = vld [vmem:[%s2636_s9 + $0x28] sm:$0xff]  ;;  %v443_v12 = vld [vmem:[%s2636_s9 + $0x20] sm:$0xff] }
  0xc9   : > { %1622 = vmatpush3.msra.mxu0 %v453_v2  ;;  %1796 = vmatpush3.msra.mxu1 %v453_v2  ;;  %v442_v13 = vld [vmem:[%s2636_s9 + $0x18] sm:$0xff]  ;;  %v441_v14 = vld [vmem:[%s2636_s9 + $0x10] sm:$0xff]  ;;  %v440_v15 = vld [vmem:[%s2636_s9 + $0x8] sm:$0xff] }
  0xca   : > { %1623 = vmatprep.subr.mxu0 %v452_v3  ;;  %1781 = vmatprep.subr.mxu1 %v452_v3  ;;  %v407_v16 = vld [vmem:[%s2628_s4] sm:$0xff]   ;;  %v409_v18 = vld [vmem:[%s2628_s4 + $0x8] sm:$0xff]   ;;  %v411_v21 = vld [vmem:[%s2628_s4 + $0x10] sm:$0xff]  }
  0xcb   : > { %1624 = vmatpush3.msra.mxu0 %v452_v3  ;;  %1797 = vmatpush3.msra.mxu1 %v452_v3  ;;  %v415_v17 = vld [vmem:[%s2628_s4 + $0x20] sm:$0xff]   ;;  %v417_v19 = vld [vmem:[%s2628_s4 + $0x28] sm:$0xff]   ;;  %v419_v22 = vld [vmem:[%s2628_s4 + $0x30] sm:$0xff]   ;;  %v682_v23 = vunpack.c.l.bf16 %v409_v18  ;;  %v680_v24 = vunpack.c.l.bf16 %v407_v16  ;;  %v683_v27 = vunpack.c.h.bf16 %v409_v18  ;;  %v681_v28 = vunpack.c.h.bf16 %v407_v16  ;;  %p1521_p12 = scmp.ne.s32.totalorder %s2968_s7, 1 }
  0xcc   : > { %1625 = vmatprep.subr.mxu0 %v451_v4  ;;  %1782 = vmatprep.subr.mxu1 %v451_v4  ;;  %v439_v20 = vld [vmem:[%s2636_s9] sm:$0xff]  ;;  %v413_v25 = vld [vmem:[%s2628_s4 + $0x18] sm:$0xff]   ;;  %v685_v29 = vunpack.c.h.bf16 %v411_v21  ;;  %v684_v30 = vunpack.c.l.bf16 %v411_v21  ;;  %v689_v33 = vunpack.c.h.bf16 %v415_v17  ;;  %v688_v34 = vunpack.c.l.bf16 %v415_v17  ;;  %v666_v41 = vld [vmem:[#allocation3 + $0x10] sm:$0xff] }
  0xcd   : > { %1626 = vmatpush3.msra.mxu0 %v451_v4  ;;  %1798 = vmatpush3.msra.mxu1 %v451_v4  ;;  %v421_v26 = vld [vmem:[%s2628_s4 + $0x38] sm:$0xff]   ;;  %v687_v31 = vunpack.c.h.bf16 %v413_v25  ;;  %v686_v32 = vunpack.c.l.bf16 %v413_v25  ;;  %v691_v35 = vunpack.c.h.bf16 %v417_v19  ;;  %v690_v36 = vunpack.c.l.bf16 %v417_v19  ;;  %v664_v42 = vld [vmem:[#allocation3] sm:$0xff]  ;;  %v665_v48 = vld [vmem:[#allocation3 + $0x8] sm:$0xff] }
  0xce   : > { %1627 = vmatprep.subr.mxu0 %v450_v5  ;;  %1783 = vmatprep.subr.mxu1 %v450_v5  ;;  %v693_v37 = vunpack.c.h.bf16 %v419_v22  ;;  %v692_v38 = vunpack.c.l.bf16 %v419_v22  ;;  %v695_v39 = vunpack.c.h.bf16 %v421_v26  ;;  %v694_v40 = vunpack.c.l.bf16 %v421_v26  ;;  %v667_v47 = vld [vmem:[#allocation3 + $0x18] sm:$0xff]  ;;  %v669_v53 = vld [vmem:[#allocation3 + $0x28] sm:$0xff]  ;;  %v668_v54 = vld [vmem:[#allocation3 + $0x20] sm:$0xff] }
  0xcf   : > { %1628 = vmatpush3.msra.mxu0 %v450_v5  ;;  %1799 = vmatpush3.msra.mxu1 %v450_v5  ;;  %v671_v59 = vld [vmem:[#allocation3 + $0x38] sm:$0xff]  ;;  %v670_v60 = vld [vmem:[#allocation3 + $0x30] sm:$0xff]  ;;  %v673_v1 = vld [vmem:[#allocation3 + $0x48] sm:$0xff] }
  0xd0   : > { %1629 = vmatprep.subr.mxu0 %v449_v6  ;;  %1784 = vmatprep.subr.mxu1 %v449_v6  ;;  %v672_v2 = vld [vmem:[#allocation3 + $0x40] sm:$0xff] }
  0xd1   : > { %1630 = vmatpush3.msra.mxu0 %v449_v6  ;;  %1800 = vmatpush3.msra.mxu1 %v449_v6 }
  0xd2   : > { %1631 = vmatprep.subr.mxu0 %v448_v7  ;;  %1785 = vmatprep.subr.mxu1 %v448_v7 }
  0xd3   : > { %1632 = vmatpush3.msra.mxu0 %v448_v7  ;;  %1801 = vmatpush3.msra.mxu1 %v448_v7  ;;  %v675_v7 = vld [vmem:[#allocation3 + $0x58] sm:$0xff] }
  0xd4   : > { %1633 = vmatprep.subr.mxu0 %v447_v8  ;;  %1786 = vmatprep.subr.mxu1 %v447_v8 }
  0xd5   : > { %1634 = vmatpush3.msra.mxu0 %v447_v8  ;;  %1802 = vmatpush3.msra.mxu1 %v447_v8  ;;  %v674_v8 = vld [vmem:[#allocation3 + $0x50] sm:$0xff] }
  0xd6   : > { %1635 = vmatprep.subr.mxu0 %v446_v9  ;;  %1787 = vmatprep.subr.mxu1 %v446_v9 }
  0xd7   : > { %1636 = vmatpush3.msra.mxu0 %v446_v9  ;;  %1803 = vmatpush3.msra.mxu1 %v446_v9 }
  0xd8   : > { %1637 = vmatprep.subr.mxu0 %v445_v10  ;;  %1788 = vmatprep.subr.mxu1 %v445_v10 }
  0xd9   : > { %1638 = vmatpush3.msra.mxu0 %v445_v10  ;;  %1804 = vmatpush3.msra.mxu1 %v445_v10 }
  0xda   : > { %1639 = vmatprep.subr.mxu0 %v444_v11  ;;  %1789 = vmatprep.subr.mxu1 %v444_v11 }
  0xdb   : > { %1640 = vmatpush3.msra.mxu0 %v444_v11  ;;  %1805 = vmatpush3.msra.mxu1 %v444_v11 }
  0xdc   : > { %1641 = vmatprep.subr.mxu0 %v443_v12  ;;  %1790 = vmatprep.subr.mxu1 %v443_v12 }
  0xdd   : > { %1642 = vmatpush3.msra.mxu0 %v443_v12  ;;  %1806 = vmatpush3.msra.mxu1 %v443_v12 }
  0xde   : > { %1643 = vmatprep.subr.mxu0 %v442_v13  ;;  %1791 = vmatprep.subr.mxu1 %v442_v13 }
  0xdf   : > { %1644 = vmatpush3.msra.mxu0 %v442_v13  ;;  %1807 = vmatpush3.msra.mxu1 %v442_v13  ;;  %v677_v13 = vld [vmem:[#allocation3 + $0x68] sm:$0xff] }
  0xe0   : > { %1645 = vmatprep.subr.mxu0 %v441_v14  ;;  %1792 = vmatprep.subr.mxu1 %v441_v14 }
  0xe1   : > { %1646 = vmatpush3.msra.mxu0 %v441_v14  ;;  %1808 = vmatpush3.msra.mxu1 %v441_v14  ;;  %v676_v14 = vld [vmem:[#allocation3 + $0x60] sm:$0xff] }
  0xe2   : > { %1647 = vmatprep.subr.mxu0 %v440_v15  ;;  %1793 = vmatprep.subr.mxu1 %v440_v15 }
  0xe3   : > { %1648 = vmatpush3.msra.mxu0 %v440_v15  ;;  %1809 = vmatpush3.msra.mxu1 %v440_v15 }
  0xe4   : > { %1649 = vmatprep.subr.mxu0 %v439_v20  ;;  %1794 = vmatprep.subr.mxu1 %v439_v20 }
  0xe5   : > { %1650 = vmatpush3.msra.mxu0 %v439_v20  ;;  %1810 = vmatpush3.msra.mxu1 %v439_v20  ;;  %v678_v20 = vld [vmem:[#allocation3 + $0x70] sm:$0xff] }
  0xe6   : > { %1651 = vmatprep.mubr.bf16.mxu0 %v407_v16  ;;  %1659 = vmatprep.mubr.bf16.mxu1 %v415_v17 }
  0xe7   : > { %1652 = vmatmul.mubr.bf16.vlgmr.msra.gmra.mxu0 %v409_v18  ;;  %1660 = vmatmul.mubr.bf16.vlgmr.msra.gmra.mxu1 %v417_v19  ;;  %v679_v19 = vld [vmem:[#allocation3 + $0x78] sm:$0xff] }
  0xe8   : > { %1655 = vmatprep.mubr.bf16.mxu0 %v411_v21  ;;  %1663 = vmatprep.mubr.bf16.mxu1 %v419_v22 }
  0xe9   : > { %700 = vadd.xlane.f32.xlu1 %v682_v23  ;;  %696 = vadd.xlane.f32.xlu0 %v680_v24 }
  0xed   : > { %702 = vadd.xlane.f32.xlu1 %v683_v27  ;;  %698 = vadd.xlane.f32.xlu0 %v681_v28 }
  0xef   : > { %1656 = vmatmul.mubr.bf16.gmra.mxu0 %v413_v25  ;;  %1664 = vmatmul.mubr.bf16.gmra.mxu1 %v421_v26  ;;  %v425_v25 = vld [vmem:[#allocation2 + $0x58] sm:$0xff]  ;;  %v433_v26 = vld [vmem:[#allocation2 + $0x10] sm:$0xff] }
  0xf1   : > { %706 = vadd.xlane.f32.xlu1 %v685_v29  ;;  %704 = vadd.xlane.f32.xlu0 %v684_v30  ;;  %v431_v29 = vld [vmem:[#allocation2 + $0x40] sm:$0xff]  ;;  %v423_v30 = vld [vmem:[#allocation2 + $0x30] sm:$0xff] }
  0xf5   : > { %710 = vadd.xlane.f32.xlu1 %v687_v31  ;;  %708 = vadd.xlane.f32.xlu0 %v686_v32 }
  0xf9   : > { %714 = vadd.xlane.f32.xlu1 %v689_v33  ;;  %712 = vadd.xlane.f32.xlu0 %v688_v34 }
  0xfd   : > { %718 = vadd.xlane.f32.xlu1 %v691_v35  ;;  %716 = vadd.xlane.f32.xlu0 %v690_v36  ;;  %v426_v35 = vld [vmem:[#allocation2 + $0x18] sm:$0xff] }
  0xfe   : > { %v434_v36 = vld [vmem:[#allocation2 + $0x38] sm:$0xff] }
 0x101   : > { %722 = vadd.xlane.f32.xlu1 %v693_v37  ;;  %720 = vadd.xlane.f32.xlu0 %v692_v38 }
 0x105   : > { %726 = vadd.xlane.f32.xlu1 %v695_v39  ;;  %724 = vadd.xlane.f32.xlu0 %v694_v40 }
 0x172   : > { %v701_v43 = vpop.xlane.xlu1 %700  ;;  %v697_v44 = vpop.xlane.xlu0 %696 }
 0x173   : > { %v730_v45 = vadd.f32 %v701_v43, %v666_v41  ;;  %v728_v46 = vadd.f32 %v697_v44, %v664_v42  ;;  %v432_v41 = vld [vmem:[#allocation2 + $0x20] sm:$0xff] }
 0x174   : > { %v424_v42 = vld [vmem:[#allocation2] sm:$0xff] }
 0x175   : > { %747 = vst.msk [vmem:[#allocation3 + $0x10] sm:$0xff] %vm744_vm1, %v730_v45  ;;  %745 = vst.msk [vmem:[#allocation3] sm:$0xff] %vm744_vm1, %v728_v46 }
 0x176   : > { %v703_v49 = vpop.xlane.xlu1 %702  ;;  %v699_v50 = vpop.xlane.xlu0 %698 }
 0x177   : > { %v731_v51 = vadd.f32 %v703_v49, %v667_v47  ;;  %v729_v52 = vadd.f32 %v699_v50, %v665_v48  ;;  %v429_v47 = vld [vmem:[#allocation2 + $0x8] sm:$0xff]  ;;  %v437_v48 = vld [vmem:[#allocation2 + $0x78] sm:$0xff] }
 0x179   : > { %748 = vst.msk [vmem:[#allocation3 + $0x18] sm:$0xff] %vm744_vm1, %v731_v51  ;;  %746 = vst.msk [vmem:[#allocation3 + $0x8] sm:$0xff] %vm744_vm1, %v729_v52 }
 0x17a   : > { %v707_v55 = vpop.xlane.xlu1 %706  ;;  %v705_v56 = vpop.xlane.xlu0 %704 }
 0x17b   : > { %v733_v57 = vadd.f32 %v707_v55, %v669_v53  ;;  %v732_v58 = vadd.f32 %v705_v56, %v668_v54  ;;  %v435_v53 = vld [vmem:[#allocation2 + $0x60] sm:$0xff]  ;;  %v427_v54 = vld [vmem:[#allocation2 + $0x50] sm:$0xff] }
 0x17d   : > { %750 = vst.msk [vmem:[#allocation3 + $0x28] sm:$0xff] %vm744_vm1, %v733_v57  ;;  %749 = vst.msk [vmem:[#allocation3 + $0x20] sm:$0xff] %vm744_vm1, %v732_v58 }
 0x17e   : > { %v711_v61 = vpop.xlane.xlu1 %710  ;;  %v709_v62 = vpop.xlane.xlu0 %708 }
 0x17f   : > { %v735_v63 = vadd.f32 %v711_v61, %v671_v59  ;;  %v734_v0 = vadd.f32 %v709_v62, %v670_v60  ;;  %v430_v59 = vld [vmem:[#allocation2 + $0x48] sm:$0xff] }
 0x180   : > { %v438_v60 = vld [vmem:[#allocation2 + $0x28] sm:$0xff] }
 0x181   : > { %752 = vst.msk [vmem:[#allocation3 + $0x38] sm:$0xff] %vm744_vm1, %v735_v63  ;;  %751 = vst.msk [vmem:[#allocation3 + $0x30] sm:$0xff] %vm744_vm1, %v734_v0 }
 0x182   : > { %v715_v3 = vpop.xlane.xlu1 %714  ;;  %v713_v4 = vpop.xlane.xlu0 %712 }
 0x183   : > { %v737_v5 = vadd.f32 %v715_v3, %v673_v1  ;;  %v736_v6 = vadd.f32 %v713_v4, %v672_v2  ;;  %v436_v1 = vld [vmem:[#allocation2 + $0x70] sm:$0xff]  ;;  %v428_v2 = vld [vmem:[#allocation2 + $0x68] sm:$0xff] }
 0x185   : > { %754 = vst.msk [vmem:[#allocation3 + $0x48] sm:$0xff] %vm744_vm1, %v737_v5  ;;  %753 = vst.msk [vmem:[#allocation3 + $0x40] sm:$0xff] %vm744_vm1, %v736_v6 }
 0x186   : > { %v719_v9 = vpop.xlane.xlu1 %718  ;;  %v717_v10 = vpop.xlane.xlu0 %716 }
 0x187   : > { %v739_v11 = vadd.f32 %v719_v9, %v675_v7  ;;  %v738_v12 = vadd.f32 %v717_v10, %v674_v8 }
 0x189   : > { %756 = vst.msk [vmem:[#allocation3 + $0x58] sm:$0xff] %vm744_vm1, %v739_v11  ;;  %755 = vst.msk [vmem:[#allocation3 + $0x50] sm:$0xff] %vm744_vm1, %v738_v12 }
 0x18a   : > { %v723_v15 = vpop.xlane.xlu1 %722  ;;  %v721_v16 = vpop.xlane.xlu0 %720 }
 0x18b   : > { %v741_v17 = vadd.f32 %v723_v15, %v677_v13  ;;  %v740_v18 = vadd.f32 %v721_v16, %v676_v14 }
 0x18d   : > { %758 = vst.msk [vmem:[#allocation3 + $0x68] sm:$0xff] %vm744_vm1, %v741_v17  ;;  %757 = vst.msk [vmem:[#allocation3 + $0x60] sm:$0xff] %vm744_vm1, %v740_v18 }
 0x18e   : > { %v727_v21 = vpop.xlane.xlu1 %726  ;;  %v725_v22 = vpop.xlane.xlu0 %724 }
 0x18f   : > { %v743_v23 = vadd.f32 %v727_v21, %v679_v19  ;;  %v742_v24 = vadd.f32 %v725_v22, %v678_v20 }
 0x191   : > { %760 = vst.msk [vmem:[#allocation3 + $0x78] sm:$0xff] %vm744_vm1, %v743_v23  ;;  %759 = vst.msk [vmem:[#allocation3 + $0x70] sm:$0xff] %vm744_vm1, %v742_v24 }
 0x1a7   : > { %v1653_v27 = vpop.f32.mrf.mxu0  ;;  %v1661_v28 = vpop.f32.mrf.mxu1 }
 0x1a8   : > { %v634_v31 = vadd.f32 %v1653_v27, %v425_v25  ;;  %v642_v32 = vadd.f32 %v1661_v28, %v433_v26 }
 0x1a9   : > { %v601_v33 = vpop.f32.mrf.mxu1  ;;  %v569_v34 = vpop.f32.mrf.mxu0 }
 0x1aa   : > { %650 = vst [vmem:[#allocation2 + $0x58] sm:$0xff] %v634_v31  ;;  %658 = vst [vmem:[#allocation2 + $0x10] sm:$0xff] %v642_v32  ;;  %v640_v37 = vadd.f32 %v601_v33, %v431_v29  ;;  %v632_v38 = vadd.f32 %v569_v34, %v423_v30 }
 0x1ab   : > { %v1654_v39 = vpop.f32.mrf.mxu0  ;;  %v1662_v40 = vpop.f32.mrf.mxu1 }
 0x1ac   : > { %656 = vst [vmem:[#allocation2 + $0x40] sm:$0xff] %v640_v37  ;;  %648 = vst [vmem:[#allocation2 + $0x30] sm:$0xff] %v632_v38  ;;  %v635_v43 = vadd.f32 %v1654_v39, %v426_v35  ;;  %v643_v44 = vadd.f32 %v1662_v40, %v434_v36 }
 0x1ad   : > { %v604_v45 = vpop.f32.mrf.mxu1  ;;  %v572_v46 = vpop.f32.mrf.mxu0 }
 0x1ae   : > { %651 = vst [vmem:[#allocation2 + $0x18] sm:$0xff] %v635_v43  ;;  %659 = vst [vmem:[#allocation2 + $0x38] sm:$0xff] %v643_v44  ;;  %v641_v49 = vadd.f32 %v604_v45, %v432_v41  ;;  %v633_v50 = vadd.f32 %v572_v46, %v424_v42 }
 0x1af   : > { %v1657_v51 = vpop.f32.mrf.mxu0  ;;  %v1665_v52 = vpop.f32.mrf.mxu1 }
 0x1b0   : > { %657 = vst [vmem:[#allocation2 + $0x20] sm:$0xff] %v641_v49  ;;  %649 = vst [vmem:[#allocation2] sm:$0xff] %v633_v50  ;;  %v638_v55 = vadd.f32 %v1657_v51, %v429_v47  ;;  %v646_v56 = vadd.f32 %v1665_v52, %v437_v48 }
 0x1b1   : > { %v617_v57 = vpop.f32.mrf.mxu1  ;;  %v585_v58 = vpop.f32.mrf.mxu0 }
 0x1b2   : > { %654 = vst [vmem:[#allocation2 + $0x8] sm:$0xff] %v638_v55  ;;  %662 = vst [vmem:[#allocation2 + $0x78] sm:$0xff] %v646_v56  ;;  %v644_v61 = vadd.f32 %v617_v57, %v435_v53  ;;  %v636_v62 = vadd.f32 %v585_v58, %v427_v54 }
 0x1b3   : > { %v1658_v63 = vpop.f32.mrf.mxu0  ;;  %v1666_v0 = vpop.f32.mrf.mxu1 }
 0x1b4   : > { %660 = vst [vmem:[#allocation2 + $0x60] sm:$0xff] %v644_v61  ;;  %652 = vst [vmem:[#allocation2 + $0x50] sm:$0xff] %v636_v62  ;;  %v639_v3 = vadd.f32 %v1658_v63, %v430_v59  ;;  %v647_v4 = vadd.f32 %v1666_v0, %v438_v60  ;;  %764 = sbr.rel (%p1521_p12) target bundleno = 821 (0x335), region = 68 }
 0x1b5   : > { %v620_v5 = vpop.f32.mrf.mxu1  ;;  %v588_v6 = vpop.f32.mrf.mxu0 }
 0x1b6   : > { %655 = vst [vmem:[#allocation2 + $0x48] sm:$0xff] %v639_v3  ;;  %663 = vst [vmem:[#allocation2 + $0x28] sm:$0xff] %v647_v4  ;;  %v645_v7 = vadd.f32 %v620_v5, %v436_v1  ;;  %v637_v8 = vadd.f32 %v588_v6, %v428_v2 }
 0x1b8   : > { %661 = vst [vmem:[#allocation2 + $0x70] sm:$0xff] %v645_v7  ;;  %653 = vst [vmem:[#allocation2 + $0x68] sm:$0xff] %v637_v8 }
 0x1b9   : > { %v767_v9 = vld [vmem:[#allocation3 + $0x10] sm:$0xff]  ;;  %v765_v10 = vld [vmem:[#allocation3] sm:$0xff]  ;;  %v768_v11 = vld [vmem:[#allocation3 + $0x18] sm:$0xff]  ;;  %v2330_v12 = vmov 0  }
 0x1ba   : > { %1993 = vset.pattern.permute.xlu1 %v2330_v12  ;;  %1992 = vset.pattern.permute.xlu0 %v2330_v12  ;;  %v2715_v13 = vadd.f32 1.0, %v767_v9  ;;  %v2717_v14 = vadd.f32 1.0, %v765_v10  ;;  %v2719_v15 = vadd.f32 1.0, %v768_v11  ;;  %v766_v16 = vld [vmem:[#allocation3 + $0x8] sm:$0xff]  ;;  %v769_v18 = vld [vmem:[#allocation3 + $0x20] sm:$0xff]  ;;  %v772_v20 = vld [vmem:[#allocation3 + $0x38] sm:$0xff] }
 0x1bb   : > { %v770_v17 = vld [vmem:[#allocation3 + $0x28] sm:$0xff]  ;;  %v2721_v19 = vadd.f32 1.0, %v766_v16  ;;  %v771_v22 = vld [vmem:[#allocation3 + $0x30] sm:$0xff]  ;;  %v2727_v23 = vadd.f32 1.0, %v769_v18  ;;  %v2730_v25 = vadd.f32 1.0, %v772_v20  ;;  %v773_v26 = vld [vmem:[#allocation3 + $0x40] sm:$0xff] }
 0x1bc   : > { %1994 = vrcp.f32 %v2715_v13  ;;  %v2724_v21 = vadd.f32 1.0, %v770_v17  ;;  %v774_v24 = vld [vmem:[#allocation3 + $0x48] sm:$0xff]  ;;  %v1004_v27 = vld [vmem:[#allocation10 + $0x78] sm:$0xff]  ;;  %v2733_v29 = vadd.f32 1.0, %v771_v22  ;;  %v1003_v30 = vld [vmem:[#allocation10 + $0x70] sm:$0xff]  ;;  %v2739_v35 = vadd.f32 1.0, %v773_v26 }
 0x1bd   : > { %1996 = vrcp.f32 %v2717_v14  ;;  %v1020_v28 = vld [vmem:[#allocation12 + $0x78] sm:$0xff]  ;;  %1723 = vmatprep.subr.mxu1 %v1004_v27  ;;  %v1019_v31 = vld [vmem:[#allocation12 + $0x70] sm:$0xff]  ;;  %v2736_v32 = vadd.f32 1.0, %v774_v24  ;;  %v1002_v33 = vld [vmem:[#allocation10 + $0x68] sm:$0xff] }
 0x1be   : > { %1998 = vrcp.f32 %v2719_v15  ;;  %1667 = vmatprep.subr.mxu0 %v1020_v28  ;;  %1724 = vmatpush3.msra.mxu1 %v1004_v27  ;;  %v1018_v34 = vld [vmem:[#allocation12 + $0x68] sm:$0xff]  ;;  %v776_v36 = vld [vmem:[#allocation3 + $0x58] sm:$0xff]  ;;  %v775_v37 = vld [vmem:[#allocation3 + $0x50] sm:$0xff] }
 0x1bf   : > { %2000 = vrcp.f32 %v2721_v19  ;;  %1668 = vmatpush3.msra.mxu0 %v1020_v28  ;;  %1725 = vmatprep.subr.mxu1 %v1003_v30  ;;  %v1001_v38 = vld [vmem:[#allocation10 + $0x60] sm:$0xff]  ;;  %v2744_v40 = vadd.f32 1.0, %v776_v36  ;;  %v1000_v41 = vld [vmem:[#allocation10 + $0x58] sm:$0xff]  ;;  %v2747_v43 = vadd.f32 1.0, %v775_v37  ;;  %v778_v44 = vld [vmem:[#allocation3 + $0x68] sm:$0xff] }
 0x1c0   : > { %2002 = vrcp.f32 %v2724_v21  ;;  %1669 = vmatprep.subr.mxu0 %v1019_v31  ;;  %1726 = vmatpush3.msra.mxu1 %v1003_v30  ;;  %v1017_v39 = vld [vmem:[#allocation12 + $0x60] sm:$0xff]  ;;  %v1016_v42 = vld [vmem:[#allocation12 + $0x58] sm:$0xff]  ;;  %v999_v46 = vld [vmem:[#allocation10 + $0x50] sm:$0xff]  ;;  %v2750_v48 = vadd.f32 1.0, %v778_v44 }
 0x1c1   : > { %2004 = vrcp.f32 %v2727_v23  ;;  %1670 = vmatpush3.msra.mxu0 %v1019_v31  ;;  %1727 = vmatprep.subr.mxu1 %v1002_v33  ;;  %v777_v45 = vld [vmem:[#allocation3 + $0x60] sm:$0xff]  ;;  %v1015_v47 = vld [vmem:[#allocation12 + $0x50] sm:$0xff]  ;;  %v998_v49 = vld [vmem:[#allocation10 + $0x48] sm:$0xff] }
 0x1c2   : > { %2006 = vrcp.f32 %v2730_v25  ;;  %1671 = vmatprep.subr.mxu0 %v1018_v34  ;;  %1728 = vmatpush3.msra.mxu1 %v1002_v33  ;;  %v1014_v50 = vld [vmem:[#allocation12 + $0x48] sm:$0xff]  ;;  %v2753_v52 = vadd.f32 1.0, %v777_v45  ;;  %v780_v53 = vld [vmem:[#allocation3 + $0x78] sm:$0xff]  ;;  %v779_v56 = vld [vmem:[#allocation3 + $0x70] sm:$0xff] }
 0x1c3   : > { %2008 = vrcp.f32 %v2733_v29  ;;  %1672 = vmatpush3.msra.mxu0 %v1018_v34  ;;  %1729 = vmatprep.subr.mxu1 %v1001_v38  ;;  %v997_v57 = vld [vmem:[#allocation10 + $0x40] sm:$0xff]  ;;  %v2759_v0 = vadd.f32 1.0, %v780_v53  ;;  %v996_v1 = vld [vmem:[#allocation10 + $0x38] sm:$0xff]  ;;  %v2763_v6 = vadd.f32 1.0, %v779_v56  ;;  %v995_v11 = vld [vmem:[#allocation10 + $0x30] sm:$0xff] }
 0x1c4   : > { %2010 = vrcp.f32 %v2736_v32  ;;  %1673 = vmatprep.subr.mxu0 %v1017_v39  ;;  %1730 = vmatpush3.msra.mxu1 %v1001_v38  ;;  %v1013_v58 = vld [vmem:[#allocation12 + $0x40] sm:$0xff]  ;;  %v1012_v2 = vld [vmem:[#allocation12 + $0x38] sm:$0xff]  ;;  %v1011_v20 = vld [vmem:[#allocation12 + $0x30] sm:$0xff] }
 0x1c5   : > { %2012 = vrcp.f32 %v2739_v35  ;;  %1674 = vmatpush3.msra.mxu0 %v1017_v39  ;;  %1731 = vmatprep.subr.mxu1 %v1000_v41  ;;  %v993_v28 = vld [vmem:[#allocation10 + $0x20] sm:$0xff]  ;;  %v1008_v45 = vld [vmem:[#allocation12 + $0x18] sm:$0xff]  ;;  %v1007_v53 = vld [vmem:[#allocation12 + $0x10] sm:$0xff] }
 0x1c6   : > { %1675 = vmatprep.subr.mxu0 %v1016_v42  ;;  %2014 = vrcp.f32 %v2744_v40  ;;  %1732 = vmatpush3.msra.mxu1 %v1000_v41  ;;  %v1009_v38 = vld [vmem:[#allocation12 + $0x20] sm:$0xff]  ;;  %v992_v41 = vld [vmem:[#allocation10 + $0x18] sm:$0xff] }
 0x1c7   : > { %1676 = vmatpush3.msra.mxu0 %v1016_v42  ;;  %2016 = vrcp.f32 %v2747_v43  ;;  %1733 = vmatprep.subr.mxu1 %v999_v46 }
 0x1c8   : > { %1677 = vmatprep.subr.mxu0 %v1015_v47  ;;  %1734 = vmatpush3.msra.mxu1 %v999_v46  ;;  %2018 = vrcp.f32 %v2750_v48  ;;  %v991_v46 = vld [vmem:[#allocation10 + $0x10] sm:$0xff] }
 0x1c9   : > { %v1995_v51 = vpop.eup %1994  ;;  %1678 = vmatpush3.msra.mxu0 %v1015_v47  ;;  %1735 = vmatprep.subr.mxu1 %v998_v49  ;;  %2020 = vrcp.f32 %v2753_v52 }
 0x1ca   : > { %v1997_v54 = vpop.eup %1996  ;;  %v815_v55 = vmul.f32 %v1995_v51, %v2715_v13  ;;  %1679 = vmatprep.subr.mxu0 %v1014_v50  ;;  %1736 = vmatpush3.msra.mxu1 %v998_v49  ;;  %2022 = vrcp.f32 %v2759_v0 }
 0x1cb   : > { %v1999_v59 = vpop.eup %1998  ;;  %v813_v60 = vmul.f32 %v1997_v54, %v2717_v14  ;;  %1680 = vmatpush3.msra.mxu0 %v1014_v50  ;;  %1737 = vmatprep.subr.mxu1 %v997_v57  ;;  %2024 = vrcp.f32 %v2763_v6 }
 0x1cc   : > { %v2001_v61 = vpop.eup %2000  ;;  %v831_v62 = vsub.f32 2.0, %v815_v55  ;;  %v816_v63 = vmul.f32 %v1999_v59, %v2719_v15  ;;  %1681 = vmatprep.subr.mxu0 %v1013_v58  ;;  %1738 = vmatpush3.msra.mxu1 %v997_v57 }
 0x1cd   : > { %v2003_v3 = vpop.eup %2002  ;;  %v829_v4 = vsub.f32 2.0, %v813_v60  ;;  %v814_v5 = vmul.f32 %v2001_v61, %v2721_v19  ;;  %1682 = vmatpush3.msra.mxu0 %v1013_v58  ;;  %1739 = vmatprep.subr.mxu1 %v996_v1  ;;  %v1006_v60 = vld [vmem:[#allocation12 + $0x8] sm:$0xff] }
 0x1ce   : > { %v2005_v7 = vpop.eup %2004  ;;  %v847_v8 = vmul.f32 %v1995_v51, %v831_v62  ;;  %v832_v9 = vsub.f32 2.0, %v816_v63  ;;  %v818_v10 = vmul.f32 %v2003_v3, %v2724_v21  ;;  %1683 = vmatprep.subr.mxu0 %v1012_v2  ;;  %1740 = vmatpush3.msra.mxu1 %v996_v1  ;;  %v994_v21 = vld [vmem:[#allocation10 + $0x28] sm:$0xff]  ;;  %v989_v62 = vld [vmem:[#allocation10] sm:$0xff] }
 0x1cf   : > { %v2007_v12 = vpop.eup %2006  ;;  %v845_v13 = vmul.f32 %v1997_v54, %v829_v4  ;;  %v830_v14 = vsub.f32 2.0, %v814_v5  ;;  %v817_v15 = vmul.f32 %v2005_v7, %v2727_v23  ;;  %1741 = vmatprep.subr.mxu1 %v995_v11  ;;  %1684 = vmatpush3.msra.mxu0 %v1012_v2  ;;  %v990_v54 = vld [vmem:[#allocation10 + $0x8] sm:$0xff]  ;;  %v973_v2 = vld [vmem:[%s2645_s21] sm:$0xff] }
 0x1d0   : > { %v2009_v16 = vpop.eup %2008  ;;  %889 = vperm.xlu1 %1993, %v847_v8   ;;  %v848_v17 = vmul.f32 %v1999_v59, %v832_v9  ;;  %v834_v18 = vsub.f32 2.0, %v818_v10  ;;  %v820_v19 = vmul.f32 %v2007_v12, %v2730_v25  ;;  %1742 = vmatpush3.msra.mxu1 %v995_v11  ;;  %v1010_v25 = vld [vmem:[#allocation12 + $0x28] sm:$0xff]  ;;  %v975_v8 = vld [vmem:[%s2645_s21 + $0x10] sm:$0xff] }
 0x1d1   : > { %v2011_v22 = vpop.eup %2010  ;;  %879 = vperm.xlu0 %1992, %v845_v13   ;;  %v846_v24 = vmul.f32 %v2001_v61, %v830_v14  ;;  %v833_v26 = vsub.f32 2.0, %v817_v15  ;;  %v819_v27 = vmul.f32 %v2009_v16, %v2733_v29  ;;  %1685 = vmatprep.subr.mxu0 %v1011_v20  ;;  %v978_v15 = vld [vmem:[%s2645_s21 + $0x28] sm:$0xff] }
 0x1d2   : > { %v2013_v23 = vpop.eup %2012  ;;  %1743 = vmatprep.subr.mxu1 %v994_v21  ;;  %v850_v30 = vmul.f32 %v2003_v3, %v834_v18  ;;  %v836_v31 = vsub.f32 2.0, %v820_v19  ;;  %v822_v33 = vmul.f32 %v2011_v22, %v2736_v32  ;;  %1686 = vmatpush3.msra.mxu0 %v1011_v20  ;;  %v1005_v3 = vld [vmem:[#allocation12] sm:$0xff]  ;;  %v982_v19 = vld [vmem:[%s2645_s21 + $0x48] sm:$0xff]  ;;  %v983_v20 = vld [vmem:[%s2645_s21 + $0x50] sm:$0xff] }
 0x1d3   : > { %v2015_v34 = vpop.eup %2014  ;;  %v849_v36 = vmul.f32 %v2005_v7, %v833_v26  ;;  %v835_v29 = vsub.f32 2.0, %v819_v27  ;;  %v821_v37 = vmul.f32 %v2013_v23, %v2739_v35  ;;  %1744 = vmatpush3.msra.mxu1 %v994_v21  ;;  %1687 = vmatprep.subr.mxu0 %v1010_v25  ;;  %v974_v7 = vld [vmem:[%s2645_s21 + $0x8] sm:$0xff]  ;;  %v981_v18 = vld [vmem:[%s2645_s21 + $0x40] sm:$0xff]  ;;  %v984_v21 = vld [vmem:[%s2645_s21 + $0x58] sm:$0xff] }
 0x1d4   : > { %894 = vperm.xlu1 %1993, %v848_v17   ;;  %v2017_v39 = vpop.eup %2016  ;;  %1745 = vmatprep.subr.mxu1 %v993_v28  ;;  %v852_v42 = vmul.f32 %v2007_v12, %v836_v31  ;;  %v838_v44 = vsub.f32 2.0, %v822_v33  ;;  %v824_v32 = vmul.f32 %v2015_v34, %v2744_v40  ;;  %v977_v12 = vld [vmem:[%s2645_s21 + $0x20] sm:$0xff]  ;;  %v980_v17 = vld [vmem:[%s2645_s21 + $0x38] sm:$0xff]  ;;  %v987_v26 = vld [vmem:[%s2645_s21 + $0x70] sm:$0xff] }
 0x1d5   : > { %884 = vperm.xlu0 %1992, %v846_v24   ;;  %1688 = vmatpush3.msra.mxu0 %v1010_v25  ;;  %v2019_v47 = vpop.eup %2018  ;;  %v851_v49 = vmul.f32 %v2009_v16, %v835_v29  ;;  %v837_v35 = vsub.f32 2.0, %v821_v37  ;;  %v823_v50 = vmul.f32 %v2017_v39, %v2747_v43  ;;  %v979_v16 = vld [vmem:[%s2645_s21 + $0x30] sm:$0xff]  ;;  %v986_v24 = vld [vmem:[%s2645_s21 + $0x68] sm:$0xff]  ;;  %v988_v27 = vld [vmem:[%s2645_s21 + $0x78] sm:$0xff] }
 0x1d6   : > { %1746 = vmatpush3.msra.mxu1 %v993_v28  ;;  %1689 = vmatprep.subr.mxu0 %v1009_v38  ;;  %v2021_v51 = vpop.eup %2020  ;;  %v854_v55 = vmul.f32 %v2011_v22, %v838_v44  ;;  %v840_v40 = vsub.f32 2.0, %v824_v32  ;;  %v826_v56 = vmul.f32 %v2019_v47, %v2750_v48  ;;  %v985_v22 = vld [vmem:[%s2645_s21 + $0x60] sm:$0xff] }
 0x1d7   : > { %1747 = vmatprep.subr.mxu1 %v992_v41  ;;  %1690 = vmatpush3.msra.mxu0 %v1009_v38  ;;  %v2023_v57 = vpop.eup %2022  ;;  %v853_v58 = vmul.f32 %v2013_v23, %v837_v35  ;;  %v839_v59 = vsub.f32 2.0, %v823_v50  ;;  %v825_v43 = vmul.f32 %v2021_v51, %v2753_v52  ;;  %v861_v23 = vld [vmem:[#allocation2 + $0x30] sm:$0xff]  ;;  %v862_v33 = vld [vmem:[#allocation2] sm:$0xff]  ;;  %v864_v38 = vld [vmem:[#allocation2 + $0x18] sm:$0xff] }
 0x1d8   : > { %904 = vperm.xlu1 %1993, %v850_v30   ;;  %1748 = vmatpush3.msra.mxu1 %v992_v41  ;;  %v2025_v61 = vpop.eup %2024  ;;  %v856_v63 = vmul.f32 %v2015_v34, %v840_v40  ;;  %v842_v48 = vsub.f32 2.0, %v826_v56  ;;  %v828_v1 = vmul.f32 %v2023_v57, %v2759_v0  ;;  %v863_v30 = vld [vmem:[#allocation2 + $0x58] sm:$0xff] }
 0x1d9   : > { %899 = vperm.xlu0 %1992, %v849_v36   ;;  %1691 = vmatprep.subr.mxu0 %v1008_v45  ;;  %v855_v52 = vmul.f32 %v2017_v39, %v839_v59  ;;  %v841_v4 = vsub.f32 2.0, %v825_v43  ;;  %v827_v5 = vmul.f32 %v2025_v61, %v2763_v6  ;;  %v976_v6 = vld [vmem:[%s2645_s21 + $0x18] sm:$0xff]  ;;  %v865_v39 = vld [vmem:[#allocation2 + $0x50] sm:$0xff] }
 0x1da   : > { %1749 = vmatprep.subr.mxu1 %v991_v46  ;;  %1692 = vmatpush3.msra.mxu0 %v1008_v45  ;;  %v858_v9 = vmul.f32 %v2019_v47, %v842_v48  ;;  %v844_v0 = vsub.f32 2.0, %v828_v1  ;;  %v866_v45 = vld [vmem:[#allocation2 + $0x68] sm:$0xff] }
 0x1db   : > { %1750 = vmatpush3.msra.mxu1 %v991_v46  ;;  %1693 = vmatprep.subr.mxu0 %v1007_v53  ;;  %v857_v10 = vmul.f32 %v2021_v51, %v841_v4  ;;  %v843_v11 = vsub.f32 2.0, %v827_v5  ;;  %v867_v46 = vld [vmem:[#allocation2 + $0x8] sm:$0xff]  ;;  %v875_v4 = vld [vmem:[#allocation2 + $0x78] sm:$0xff] }
 0x1dc   : > { %914 = vperm.xlu1 %1993, %v852_v42   ;;  %1751 = vmatprep.subr.mxu1 %v990_v54  ;;  %v860_v13 = vmul.f32 %v2023_v57, %v844_v0  ;;  %v868_v51 = vld [vmem:[#allocation2 + $0x48] sm:$0xff]  ;;  %v870_v57 = vld [vmem:[#allocation2 + $0x20] sm:$0xff] }
 0x1dd   : > { %909 = vperm.xlu0 %1992, %v851_v49   ;;  %1694 = vmatpush3.msra.mxu0 %v1007_v53  ;;  %v859_v14 = vmul.f32 %v2025_v61, %v843_v11  ;;  %v869_v53 = vld [vmem:[#allocation2 + $0x40] sm:$0xff] }
 0x1de   : > { %1752 = vmatpush3.msra.mxu1 %v990_v54  ;;  %1695 = vmatprep.subr.mxu0 %v1006_v60 }
 0x1df   : > { %1753 = vmatprep.subr.mxu1 %v989_v62  ;;  %1696 = vmatpush3.msra.mxu0 %v1006_v60 }
 0x1e0   : > { %924 = vperm.xlu1 %1993, %v854_v55   ;;  %1754 = vmatpush3.msra.mxu1 %v989_v62  ;;  %v872_v62 = vld [vmem:[#allocation2 + $0x38] sm:$0xff] }
 0x1e1   : > { %919 = vperm.xlu0 %1992, %v853_v58   ;;  %1755 = vmatprep.mubr.f32.mxu1 %v973_v2  ;;  %v871_v58 = vld [vmem:[#allocation2 + $0x10] sm:$0xff] }
 0x1e2   : > { %1697 = vmatprep.subr.mxu0 %v1005_v3  ;;  %1756 = vmatmul.mubr.f32.vlgmr.msra.gmra.mxu1 %v974_v7 }
 0x1e3   : > { %1698 = vmatpush3.msra.mxu0 %v1005_v3  ;;  %1758 = vmatprep.mubr.f32.mxu1 %v975_v8 }
 0x1e4   : > { %934 = vperm.xlu1 %1993, %v856_v63   ;;  %v873_v63 = vld [vmem:[#allocation2 + $0x60] sm:$0xff] }
 0x1e5   : > { %929 = vperm.xlu0 %1992, %v855_v52   ;;  %v874_v52 = vld [vmem:[#allocation2 + $0x70] sm:$0xff] }
 0x1e6   : > { %1759 = vmatmul.mubr.f32.gmra.mxu1 %v976_v6 }
 0x1e7   : > { %1761 = vmatprep.mubr.f32.mxu1 %v977_v12 }
 0x1e8   : > { %944 = vperm.xlu1 %1993, %v858_v9   ;;  %v876_v9 = vld [vmem:[#allocation2 + $0x28] sm:$0xff] }
 0x1e9   : > { %939 = vperm.xlu0 %1992, %v857_v10  }
 0x1ea   : > { %1762 = vmatmul.mubr.f32.gmra.mxu1 %v978_v15 }
 0x1eb   : > { %1764 = vmatprep.mubr.f32.mxu1 %v979_v16 }
 0x1ec   : > { %954 = vperm.xlu1 %1993, %v860_v13  }
 0x1ed   : > { %949 = vperm.xlu0 %1992, %v859_v14  }
 0x1ee   : > { %1765 = vmatmul.mubr.f32.gmra.mxu1 %v980_v17 }
 0x1ef   : > { %1767 = vmatprep.mubr.f32.mxu1 %v981_v18 }
 0x1f2   : > { %1768 = vmatmul.mubr.f32.gmra.mxu1 %v982_v19 }
 0x1f3   : > { %1770 = vmatprep.mubr.f32.mxu1 %v983_v20 }
 0x1f6   : > { %1771 = vmatmul.mubr.f32.gmra.mxu1 %v984_v21 }
 0x1f7   : > { %1773 = vmatprep.mubr.f32.mxu1 %v985_v22 }
 0x1fa   : > { %1774 = vmatmul.mubr.f32.gmra.mxu1 %v986_v24 }
 0x1fb   : > { %1776 = vmatprep.mubr.f32.mxu1 %v987_v26 }
 0x1fe   : > { %1777 = vmatmul.mubr.f32.gmra.mxu1 %v988_v27 }
 0x24b   : > { %v890_v25 = vpop.permute.xlu1 %889 }
 0x24c   : > { %v880_v28 = vpop.permute.xlu0 %879  ;;  %v959_v36 = vmul.f32 %v890_v25, %v863_v30 }
 0x24d   : > { %v957_v31 = vmul.f32 %v880_v28, %v861_v23 }
 0x24f   : > { %1699 = vmatprep.mubr.f32.mxu0 %v957_v31  ;;  %v895_v34 = vpop.permute.xlu1 %894 }
 0x250   : > { %v885_v29 = vpop.permute.xlu0 %884  ;;  %v960_v44 = vmul.f32 %v895_v34, %v864_v38 }
 0x251   : > { %v958_v37 = vmul.f32 %v885_v29, %v862_v33 }
 0x253   : > { %1700 = vmatmul.mubr.f32.vlgmr.msra.gmra.mxu0 %v958_v37  ;;  %v905_v41 = vpop.permute.xlu1 %904 }
 0x254   : > { %1702 = vmatprep.mubr.f32.mxu0 %v959_v36  ;;  %v900_v42 = vpop.permute.xlu0 %899  ;;  %v962_v35 = vmul.f32 %v905_v41, %v866_v45 }
 0x255   : > { %v961_v32 = vmul.f32 %v900_v42, %v865_v39 }
 0x257   : > { %1703 = vmatmul.mubr.f32.gmra.mxu0 %v960_v44  ;;  %v915_v47 = vpop.permute.xlu1 %914 }
 0x258   : > { %1705 = vmatprep.mubr.f32.mxu0 %v961_v32  ;;  %v910_v49 = vpop.permute.xlu0 %909  ;;  %v964_v40 = vmul.f32 %v915_v47, %v868_v51 }
 0x259   : > { %v963_v50 = vmul.f32 %v910_v49, %v867_v46 }
 0x25b   : > { %1706 = vmatmul.mubr.f32.gmra.mxu0 %v962_v35  ;;  %v925_v54 = vpop.permute.xlu1 %924 }
 0x25c   : > { %1708 = vmatprep.mubr.f32.mxu0 %v963_v50  ;;  %v920_v55 = vpop.permute.xlu0 %919  ;;  %v966_v60 = vmul.f32 %v925_v54, %v870_v57 }
 0x25d   : > { %v965_v56 = vmul.f32 %v920_v55, %v869_v53 }
 0x25f   : > { %1709 = vmatmul.mubr.f32.gmra.mxu0 %v964_v40  ;;  %v935_v59 = vpop.permute.xlu1 %934 }
 0x260   : > { %1711 = vmatprep.mubr.f32.mxu0 %v965_v56  ;;  %v930_v43 = vpop.permute.xlu0 %929  ;;  %v968_v2 = vmul.f32 %v935_v59, %v872_v62 }
 0x261   : > { %v967_v61 = vmul.f32 %v930_v43, %v871_v58 }
 0x263   : > { %1712 = vmatmul.mubr.f32.gmra.mxu0 %v966_v60  ;;  %v945_v48 = vpop.permute.xlu1 %944 }
 0x264   : > { %1714 = vmatprep.mubr.f32.mxu0 %v967_v61  ;;  %v940_v1 = vpop.permute.xlu0 %939  ;;  %v970_v7 = vmul.f32 %v945_v48, %v874_v52 }
 0x265   : > { %v969_v3 = vmul.f32 %v940_v1, %v873_v63 }
 0x267   : > { %1715 = vmatmul.mubr.f32.gmra.mxu0 %v968_v2  ;;  %v955_v0 = vpop.permute.xlu1 %954 }
 0x268   : > { %1717 = vmatprep.mubr.f32.mxu0 %v969_v3  ;;  %v950_v5 = vpop.permute.xlu0 %949  ;;  %v972_v10 = vmul.f32 %v955_v0, %v876_v9 }
 0x269   : > { %v971_v8 = vmul.f32 %v950_v5, %v875_v4 }
 0x26b   : > { %1718 = vmatmul.mubr.f32.gmra.mxu0 %v970_v7 }
 0x26c   : > { %1720 = vmatprep.mubr.f32.mxu0 %v971_v8 }
 0x26f   : > { %1721 = vmatmul.mubr.f32.gmra.mxu0 %v972_v10 }
 0x2a2   : > { %v1757_v11 = vpop.f32.mrf.mxu1 }
 0x2a4   : > { %v1232_v6 = vpop.f32.mrf.mxu1 }
 0x2a6   : > { %v1760_v12 = vpop.f32.mrf.mxu1 }
 0x2a8   : > { %v1242_v13 = vpop.f32.mrf.mxu1 }
 0x2aa   : > { %v1763_v14 = vpop.f32.mrf.mxu1 }
 0x2ac   : > { %v1252_v15 = vpop.f32.mrf.mxu1 }
 0x2ae   : > { %v1766_v16 = vpop.f32.mrf.mxu1 }
 0x2b0   : > { %v1262_v17 = vpop.f32.mrf.mxu1 }
 0x2b2   : > { %v1769_v21 = vpop.f32.mrf.mxu1 }
 0x2b4   : > { %v1272_v23 = vpop.f32.mrf.mxu1 }
 0x2b6   : > { %v1772_v33 = vpop.f32.mrf.mxu1 }
 0x2b8   : > { %v1282_v38 = vpop.f32.mrf.mxu1 }
 0x2ba   : > { %v1775_v32 = vpop.f32.mrf.mxu1 }
 0x2bc   : > { %v1292_v35 = vpop.f32.mrf.mxu1 }
 0x2be   : > { %v1778_v55 = vpop.f32.mrf.mxu1 }
 0x2c0   : > { %v1302_v58 = vpop.f32.mrf.mxu1 }
 0x313   : > { %v1701_v18 = vpop.f32.mrf.mxu0 }
 0x314   : > { %v1238_v19 = vadd.f32 %v1757_v11, %v1701_v18 }
 0x315   : > { %v1087_v20 = vpop.f32.mrf.mxu0 }
 0x316   : > { %1312 = vst [vmem:[%s2655_s27 + $0x8] sm:$0xff] %v1238_v19  ;;  %v1233_v22 = vadd.f32 %v1232_v6, %v1087_v20 }
 0x317   : > { %v1704_v24 = vpop.f32.mrf.mxu0 }
 0x318   : > { %1311 = vst [vmem:[%s2655_s27] sm:$0xff] %v1233_v22  ;;  %v1248_v26 = vadd.f32 %v1760_v12, %v1704_v24 }
 0x319   : > { %v1097_v27 = vpop.f32.mrf.mxu0 }
 0x31a   : > { %1314 = vst [vmem:[%s2655_s27 + $0x18] sm:$0xff] %v1248_v26  ;;  %v1243_v25 = vadd.f32 %v1242_v13, %v1097_v27 }
 0x31b   : > { %v1707_v28 = vpop.f32.mrf.mxu0 }
 0x31c   : > { %1313 = vst [vmem:[%s2655_s27 + $0x10] sm:$0xff] %v1243_v25  ;;  %v1258_v30 = vadd.f32 %v1763_v14, %v1707_v28 }
 0x31d   : > { %v1107_v31 = vpop.f32.mrf.mxu0 }
 0x31e   : > { %1316 = vst [vmem:[%s2655_s27 + $0x28] sm:$0xff] %v1258_v30  ;;  %v1253_v34 = vadd.f32 %v1252_v15, %v1107_v31 }
 0x31f   : > { %v1710_v36 = vpop.f32.mrf.mxu0 }
 0x320   : > { %1315 = vst [vmem:[%s2655_s27 + $0x20] sm:$0xff] %v1253_v34  ;;  %v1268_v29 = vadd.f32 %v1766_v16, %v1710_v36 }
 0x321   : > { %v1117_v37 = vpop.f32.mrf.mxu0 }
 0x322   : > { %1318 = vst [vmem:[%s2655_s27 + $0x38] sm:$0xff] %v1268_v29  ;;  %v1263_v39 = vadd.f32 %v1262_v17, %v1117_v37 }
 0x323   : > { %v1713_v41 = vpop.f32.mrf.mxu0 }
 0x324   : > { %1317 = vst [vmem:[%s2655_s27 + $0x30] sm:$0xff] %v1263_v39  ;;  %v1278_v42 = vadd.f32 %v1769_v21, %v1713_v41 }
 0x325   : > { %v1127_v44 = vpop.f32.mrf.mxu0 }
 0x326   : > { %1320 = vst [vmem:[%s2655_s27 + $0x48] sm:$0xff] %v1278_v42  ;;  %v1273_v45 = vadd.f32 %v1272_v23, %v1127_v44 }
 0x327   : > { %v1716_v46 = vpop.f32.mrf.mxu0 }
 0x328   : > { %1319 = vst [vmem:[%s2655_s27 + $0x40] sm:$0xff] %v1273_v45  ;;  %v1288_v47 = vadd.f32 %v1772_v33, %v1716_v46 }
 0x329   : > { %v1137_v49 = vpop.f32.mrf.mxu0 }
 0x32a   : > { %1322 = vst [vmem:[%s2655_s27 + $0x58] sm:$0xff] %v1288_v47  ;;  %v1283_v50 = vadd.f32 %v1282_v38, %v1137_v49 }
 0x32b   : > { %v1719_v51 = vpop.f32.mrf.mxu0 }
 0x32c   : > { %1321 = vst [vmem:[%s2655_s27 + $0x50] sm:$0xff] %v1283_v50  ;;  %v1298_v53 = vadd.f32 %v1775_v32, %v1719_v51 }
 0x32d   : > { %v1147_v54 = vpop.f32.mrf.mxu0 }
 0x32e   : > { %1324 = vst [vmem:[%s2655_s27 + $0x68] sm:$0xff] %v1298_v53  ;;  %v1293_v40 = vadd.f32 %v1292_v35, %v1147_v54 }
 0x32f   : > { %v1722_v56 = vpop.f32.mrf.mxu0 }
 0x330   : > { %1323 = vst [vmem:[%s2655_s27 + $0x60] sm:$0xff] %v1293_v40  ;;  %v1308_v57 = vadd.f32 %v1778_v55, %v1722_v56 }
 0x331   : > { %v1157_v59 = vpop.f32.mrf.mxu0 }
 0x332   : > { %1326 = vst [vmem:[%s2655_s27 + $0x78] sm:$0xff] %v1308_v57  ;;  %v1303_v43 = vadd.f32 %v1302_v58, %v1157_v59 }
 0x334   : > { %1325 = vst [vmem:[%s2655_s27 + $0x70] sm:$0xff] %v1303_v43 }
 0x335 PF: > { %s2969_s5 = sld [smem:[#allocation21_spill]]  ;;  %s1341_s11 = sshll.u32 %s2655_s27, 4  ;;  %s2818_s11 = int_to_ptr.vmem [resolvable:$true] %s1341_s11 }
 0x336   : > { %s2970_s4 = sld [smem:[#allocation32_spill]]  ;;  %s2822_s14 = scalar_lea.sflag [#allocation6], %s318_s1 }
 0x337   : > { %s2162_s2 = scalar_lea.vmem %s2818_s11, 2048  ;;  %s2331_s10 = smov [#allocation13]  }
 0x338   : > { %p2163_p5 = scmp.ne.s32.totalorder %s2818_s11, %s2162_s2  ;;  %s2166_s3 = sshll.u32 %s2331_s10, 4  ;;  %s2167_s3 = int_to_ptr.vmem [resolvable:$false] %s2166_s3 }
 0x339   : > { %s2168_s9 = scalar_lea.vmem %s2167_s3, 4096  ;;  %p2169_p6 = scmp.lt.s32.totalorder %s2818_s11, %s2167_s3 }
 0x33a   : > { %p2164_p0 = pnand %p2163_p5, %p2599_p1  ;;  %p2170_p9 = scmp.lt.s32.totalorder %s2168_s9, %s2162_s2 }
 0x33b   : > { %s1530_s24 = sshll.u32 %s2969_s5, 11 }
 0x33c   : > { %s2815_s0 = scalar_lea.hbm %s2970_s4, %s1530_s24  ;;  %p2165_p3 = pneg %p2164_p0 }
 0x33d   : > { %p2171_p11 = por %p2170_p9, %p2169_p6 }
 0x33f   : > { %p2172_p13 = pnand %p2171_p11, %p2165_p3 }
 0x341   : > { %2175 = shalt.err (!%p2172_p13)
}
 0x342   : > { %s2176_s1 = scalar_lea.hbm %s2815_s0, 2048  ;;  %s2180_s27 = scalar_lea.hbm %s2970_s4, 4096 }
 0x343   : > { %p2177_p2 = scmp.ne.s32.totalorder %s2815_s0, %s2176_s1  ;;  %p2181_p4 = scmp.lt.s32.totalorder %s2815_s0, %s2970_s4 }
 0x344   : > { %p2182_p7 = scmp.lt.s32.totalorder %s2180_s27, %s2176_s1 }
 0x345   : > { %p2178_p8 = pnand %p2177_p2, %p2599_p1 }
 0x346   : > { %p2183_p12 = por %p2182_p7, %p2181_p4 }
 0x347   : > { %p2179_p10 = pneg %p2178_p8 }
 0x349   : > { %p2184_p5 = pnand %p2183_p12, %p2179_p10 }
 0x34b   : > { %2187 = shalt.err (!%p2184_p5)
}
 0x34c   : > { %s2332_s5 = smov 128   ;;  %s2333_s24 = smov 8  }
 0x34d   : > { %1825 = dma.vmem_to_hbm [thread:$0]  (%p2599_p1), %s2818_s11, 2048, %s2815_s0, %s2822_s14, %s2332_s5, %s2332_s5, %s2333_s24  }
 0x34e PF: > { %p1853_p0 = scmp.ge.s32.totalorder %s2318_s6, 2  ;;  %s1356_s28 = sand.u32 1, %s2266_s18  }
 0x34f   : > { %p2971_p3 = scmp.ne.s32.totalorder %s2956_s16, 0  ;;  %s1357_s22 = scalar_lea.sflag [#allocation6], %s1356_s28 }
 0x351   : > { %p1845_p6 = pnand %p1853_p0, %p2971_p3 }
 0x353   : > { %p1846_p9 = pneg %p1845_p6 }
 0x355   : > { %2261 = dma.done.wait (%p1846_p9), %s1357_s22, 2048  }
 0x356   : > { %2263 = vsyncadd (%p1846_p9), %s1357_s22, 4294965248  ;;  %s25_s6 = sadd.s32 1, %s2318_s6   ;;  %s2973_s21 = sld [smem:[#allocation19_spill]] }
 0x357   : > { %p2850_p11 = scmp.ge.s32.totalorder %s25_s6, 6   ;;  %s2974_s15 = sld [smem:[#allocation25_spill]] }
 0x358   : > { %s2975_s16 = sld [smem:[#allocation23_spill]]  ;;  %s2977_s18 = smov %s2270_s19 }
 0x359   : > { %s2976_s0 = sld [smem:[#allocation24_spill]]  ;;  %s2978_s19 = smov %s2274_s20 }
 0x35a   : > { %s2979_s20 = smov %s2582_s13  ;;  %s2980_s22 = smov %s2286_s23 }
 0x35b   : > { %s2982_s24 = smov %s2294_s25  ;;  %s2983_s25 = smov %s2298_s26 }
 0x35c   : > { %s2984_s26 = smov %s2546_s8  ;;  %s2985_s27 = smov %s2310_s29 }
 0x35d   : > { %s2981_s23 = smov %s2974_s15  ;;  %s2986_s28 = smov %s2314_s30 }
 0x35e   : > { %s2987_s29 = smov %s2975_s16  ;;  %24 = sbr.rel (!%p2850_p11) target bundleno = 20 (0x14), region = 125 }
 0x35f   : > { %s2988_s30 = smov %s2976_s0 }
 0x363   :  { %1362 = vsyncpa [#allocation5], 1 }
 0x364   :  { %1364 = vsyncpa [#allocation5 + $0x1], 1 }
 0x365   :  { %1365 = vsyncpa [#allocation8], 1 }
 0x366   :  { %1367 = vsyncpa [#allocation8 + $0x1], 1 }
 0x367   :  { %1368 = vsyncpa [#allocation11], 1 }
 0x368   :  { %1369 = vsyncpa [#allocation6], 1 }
 0x369   :  { %1371 = vsyncpa [#allocation6 + $0x1], 1 }

</bundles_post_ra>
